<compile_context>
chip_gen: v7x
topology: tpu7x:2x2x1
jax: 0.10.0
libtpu: 0.0.40
codegen_flags: <defaults>
</compile_context>

<pallas_src>
import math
from functools import partial

import jax
import jax.numpy as jnp
from jax.experimental import pallas as pl
from jax.experimental.pallas import tpu as pltpu


# ------------------------------ in-kernel math ------------------------------

def _snake(x, alpha):
    # snake(x) = x + 1/(alpha + 1e-9) * sin(alpha*x)^2   (matches the torch op;
    # snake(0) == 0, so zero padding commutes with snake)
    return x + (1.0 / (alpha + 1e-9)) * jnp.sin(alpha * x) ** 2


def _conv_taps(s, K, d, pad, stride, L_out):
    """im2col for a 1-D conv built with 0/1 tap-selection matmuls.

    Tap k of the conv reads padded position stride*t + k*d, i.e. un-padded
    position j = stride*t + k*d - pad.  Selecting that column (with an implicit
    zero when j is out of range == zero padding) is exactly  s @ T_k  with
    T_k[j, t] = (j == stride*t + k*d - pad).  The K selected (C, L_out) slabs
    are stacked on the sublane axis so the conv becomes one
    (C_out, K*C) @ (K*C, L_out) MXU dot.
    """
    L = s.shape[1]
    r = jax.lax.broadcasted_iota(jnp.int32, (L, L_out), 0)
    c = jax.lax.broadcasted_iota(jnp.int32, (L, L_out), 1)
    base = r - stride * c                       # hoisted; reused for every tap
    cols = []
    for k in range(K):                          # static unroll, K <= 7
        sel = (base == (k * d - pad)).astype(s.dtype)   # shifted 0/1 identity
        cols.append(jnp.dot(s, sel, preferred_element_type=jnp.float32))
    return cols[0] if K == 1 else jnp.concatenate(cols, axis=0)


def _encoder_block_kernel(dilations, stride,
                          x_ref, a1_ref, w1_ref, b1_ref,
                          a2_ref, w2_ref, b2_ref,
                          af_ref, wf_ref, bf_ref, o_ref):
    """Whole EncoderBlock for one batch element; intermediates stay in VMEM."""
    _, L = x_ref.shape
    h = x_ref[...]                                          # (C, L) f32

    # ---- 3x ResidualUnit: Snake -> Conv(k=7, dil) -> Snake -> Conv(k=1) + res
    for i, d in enumerate(dilations):
        pad = (7 - 1) * d // 2                  # lengths match -> no crop
        s = _snake(h, a1_ref[i])                # snake once per conv (hoisted)
        im = _conv_taps(s, 7, d, pad, 1, L)     # (7*C, L)
        y = jnp.dot(w1_ref[i], im,
                    preferred_element_type=jnp.float32) + b1_ref[i]
        s2 = _snake(y, a2_ref[i])
        h = jnp.dot(w2_ref[i], s2,              # 1x1 conv + fused residual add
                    preferred_element_type=jnp.float32) + b2_ref[i] + h

    # ---- final Snake -> strided WNConv1d (only strided columns are computed)
    Kf = 2 * stride
    pad_f = math.ceil(stride / 2)
    L_out = o_ref.shape[1]
    s = _snake(h, af_ref[...])
    im = _conv_taps(s, Kf, 1, pad_f, stride, L_out)         # (Kf*C, L_out)
    y = jnp.dot(wf_ref[...], im,
                preferred_element_type=jnp.float32) + bf_ref[...]
    o_ref[...] = y.astype(o_ref.dtype)


# ------------------------------ pallas wrapper -------------------------------

def encoder_block(x, params):
    """x: (B, C, L) f32 (NCL). Returns (B, 2*C, L_out) f32."""
    B, C, L = x.shape
    stride = params["stride"]
    dilations = params["dilations"]
    p = params["packed"]
    C_out = p["wf"].shape[0]
    pad_f = math.ceil(stride / 2)
    L_out = (L + 2 * pad_f - 2 * stride) // stride + 1

    def bcast(a):                               # small param, same block each step
        nd = a.ndim
        return pl.BlockSpec(a.shape, lambda i: (0,) * nd)

    kernel = partial(_encoder_block_kernel, dilations, stride)
    return pl.pallas_call(
        kernel,
        out_shape=jax.ShapeDtypeStruct((B, C_out, L_out), jnp.float32),
        grid=(B,),                              # one batch element per grid step
        in_specs=[
            pl.BlockSpec((None, C, L), lambda i: (i, 0, 0)),      # x (per batch)
            bcast(p["a1"]), bcast(p["w1"]), bcast(p["b1"]),
            bcast(p["a2"]), bcast(p["w2"]), bcast(p["b2"]),
            bcast(p["af"]), bcast(p["wf"]), bcast(p["bf"]),
        ],
        out_specs=pl.BlockSpec((None, C_out, L_out), lambda i: (i, 0, 0)),
        compiler_params=pltpu.CompilerParams(
            dimension_semantics=("parallel",)),  # batch across TCs on v7x
    )(x, p["a1"], p["w1"], p["b1"], p["a2"], p["w2"], p["b2"],
      p["af"], p["wf"], p["bf"])


# ----------------------------- parameter setup -------------------------------

def _init_wn_conv(key, c_out, c_in, K):
    """Synthetic weight-norm Conv1d params. Weight-norm (g*v/||v||) is parameter
    glue, folded here in plain JAX into the effective weight."""
    k1, k2, k3 = jax.random.split(key, 3)
    v = jax.random.normal(k1, (c_out, c_in, K), jnp.float32) * 0.2
    g = jax.random.uniform(k2, (c_out, 1, 1), jnp.float32, minval=0.5, maxval=1.5)
    w = g * v / jnp.sqrt(jnp.sum(v * v, axis=(1, 2), keepdims=True))  # (O, I, K)
    b = jax.random.normal(k3, (c_out,), jnp.float32) * 0.1
    return {
        "w_oik": w,                                           # torch OIW (reference)
        # im2col layout: rows ordered (tap k major, c_in minor)
        "w_mat": jnp.transpose(w, (0, 2, 1)).reshape(c_out, K * c_in),
        "b": b.reshape(c_out, 1),
        "b_flat": b,
    }


def init_encoder_block_params(key, dim=16, stride=1):
    half = dim // 2
    keys = jax.random.split(key, 12)
    dilations = (1, 3, 9)
    ru = []
    for i, d in enumerate(dilations):
        ru.append({
            "alpha1": jax.random.uniform(keys[4 * i + 0], (half, 1), jnp.float32,
                                         minval=0.5, maxval=1.5),
            "conv1": _init_wn_conv(keys[4 * i + 1], half, half, 7),
            "alpha2": jax.random.uniform(keys[4 * i + 2], (half, 1), jnp.float32,
                                         minval=0.5, maxval=1.5),
            "conv2": _init_wn_conv(keys[4 * i + 3], half, half, 1),
            "dilation": d,
        })
    alpha_f = jax.random.uniform(keys[10], (half, 1), jnp.float32,
                                 minval=0.5, maxval=1.5)
    conv_f = _init_wn_conv(keys[11], dim, half, 2 * stride)
    return {
        "stride": stride, "dilations": dilations, "ru": ru,
        "alpha_f": alpha_f, "conv_f": conv_f,
        # pre-packed kernel-ready tensors (stacked over the 3 residual units)
        "packed": {
            "a1": jnp.stack([u["alpha1"] for u in ru]),
            "w1": jnp.stack([u["conv1"]["w_mat"] for u in ru]),
            "b1": jnp.stack([u["conv1"]["b"] for u in ru]),
            "a2": jnp.stack([u["alpha2"] for u in ru]),
            "w2": jnp.stack([u["conv2"]["w_mat"] for u in ru]),
            "b2": jnp.stack([u["conv2"]["b"] for u in ru]),
            "af": alpha_f, "wf": conv_f["w_mat"], "bf": conv_f["b"],
        },
    }


# ------------------------------- JAX reference --------------------------------

def _ref_conv1d(x, w_oik, b, stride, padding, dilation):
    y = jax.lax.conv_general_dilated(
        x, w_oik, window_strides=(stride,), padding=[(padding, padding)],
        rhs_dilation=(dilation,), dimension_numbers=("NCH", "OIH", "NCH"))
    return y + b[None, :, None]


def encoder_block_ref(x, params):
    for u in params["ru"]:
        d = u["dilation"]
        pad = (7 - 1) * d // 2
        y = _snake(x, u["alpha1"][None])
        y = _ref_conv1d(y, u["conv1"]["w_oik"], u["conv1"]["b_flat"], 1, pad, d)
        y = _snake(y, u["alpha2"][None])
        y = _ref_conv1d(y, u["conv2"]["w_oik"], u["conv2"]["b_flat"], 1, 0, 1)
        x = x + y
    stride = params["stride"]
    pad = math.ceil(stride / 2)
    y = _snake(x, params["alpha_f"][None])
    return _ref_conv1d(y, params["conv_f"]["w_oik"], params["conv_f"]["b_flat"],
                       stride, pad, 1)


# ------------------------------------ main -------------------------------------

if __name__ == "__main__":
    key = jax.random.PRNGKey(0)
    k_x, k_p = jax.random.split(key)

    dim, stride = 16, 2            # EncoderBlock(dim=16, stride=2)
    B, L = 2, 32
    # EncoderBlock input has dim // 2 channels (NCL layout).
    x = jax.random.normal(k_x, (B, dim // 2, L), jnp.float32)

    params = init_encoder_block_params(k_p, dim=dim, stride=stride)

    out = jax.block_until_ready(encoder_block(x, params))
    ref = encoder_block_ref(x, params)
    assert out.shape == ref.shape, (out.shape, ref.shape)
    err = float(jnp.max(jnp.abs(out - ref)))
    assert jnp.allclose(out, ref, atol=1e-4, rtol=1e-4), err
    print("KERNEL_OK")
</pallas_src>

<mosaic_0001>
module attributes {stable_mosaic.version = 11 : i64} {
  func.func @_encoder_block_kernel(%arg0: i32, %arg1: memref<1x8x32xf32, #tpu.memory_space<vmem>>, %arg2: memref<3x8x1xf32, #tpu.memory_space<vmem>>, %arg3: memref<3x8x56xf32, #tpu.memory_space<vmem>>, %arg4: memref<3x8x1xf32, #tpu.memory_space<vmem>>, %arg5: memref<3x8x1xf32, #tpu.memory_space<vmem>>, %arg6: memref<3x8x8xf32, #tpu.memory_space<vmem>>, %arg7: memref<3x8x1xf32, #tpu.memory_space<vmem>>, %arg8: memref<8x1xf32, #tpu.memory_space<vmem>>, %arg9: memref<16x32xf32, #tpu.memory_space<vmem>>, %arg10: memref<16x1xf32, #tpu.memory_space<vmem>>, %arg11: memref<1x16x16xf32, #tpu.memory_space<vmem>>) attributes {dimension_semantics = [#tpu.dimension_semantics<parallel>], iteration_bounds = array<i64: 2>, scalar_prefetch = 0 : i64, scratch_operands = 0 : i64, tpu.core_type = #tpu.core_type<tc>, window_params = [{transform_indices = @transform_0, window_bounds = array<i64: 1, 8, 32>}, {pipeline_mode = #tpu.pipeline_mode<synchronous>, transform_indices = @transform_1, window_bounds = array<i64: 3, 8, 1>}, {pipeline_mode = #tpu.pipeline_mode<synchronous>, transform_indices = @transform_2, window_bounds = array<i64: 3, 8, 56>}, {pipeline_mode = #tpu.pipeline_mode<synchronous>, transform_indices = @transform_3, window_bounds = array<i64: 3, 8, 1>}, {pipeline_mode = #tpu.pipeline_mode<synchronous>, transform_indices = @transform_4, window_bounds = array<i64: 3, 8, 1>}, {pipeline_mode = #tpu.pipeline_mode<synchronous>, transform_indices = @transform_5, window_bounds = array<i64: 3, 8, 8>}, {pipeline_mode = #tpu.pipeline_mode<synchronous>, transform_indices = @transform_6, window_bounds = array<i64: 3, 8, 1>}, {pipeline_mode = #tpu.pipeline_mode<synchronous>, transform_indices = @transform_7, window_bounds = array<i64: 8, 1>}, {pipeline_mode = #tpu.pipeline_mode<synchronous>, transform_indices = @transform_8, window_bounds = array<i64: 16, 32>}, {pipeline_mode = #tpu.pipeline_mode<synchronous>, transform_indices = @transform_9, window_bounds = array<i64: 16, 1>}, {transform_indices = @transform_10, window_bounds = array<i64: 1, 16, 16>}]} {
    %c0 = arith.constant 0 : index
    %c0_0 = arith.constant 0 : index
    %c0_1 = arith.constant 0 : index
    %0 = vector.load %arg1[%c0, %c0_0, %c0_1] : memref<1x8x32xf32, #tpu.memory_space<vmem>>, vector<1x8x32xf32>
    %1 = vector.shape_cast %0 : vector<1x8x32xf32> to vector<8x32xf32>
    %c0_2 = arith.constant 0 : index
    %c0_3 = arith.constant 0 : index
    %c0_4 = arith.constant 0 : index
    %2 = vector.load %arg2[%c0_2, %c0_3, %c0_4] : memref<3x8x1xf32, #tpu.memory_space<vmem>>, vector<1x8x1xf32>
    %3 = vector.shape_cast %2 : vector<1x8x1xf32> to vector<8x1xf32>
    %cst = arith.constant 9.99999971E-10 : f32
    %4 = vector.broadcast %cst : f32 to vector<8x1xf32>
    %5 = arith.addf %3, %4 : vector<8x1xf32>
    %cst_5 = arith.constant 1.000000e+00 : f32
    %6 = vector.broadcast %cst_5 : f32 to vector<8x1xf32>
    %7 = arith.divf %6, %5 : vector<8x1xf32>
    %8 = vector.broadcast %3 : vector<8x1xf32> to vector<8x32xf32>
    %9 = arith.mulf %8, %1 : vector<8x32xf32>
    %10 = math.sin %9 : vector<8x32xf32>
    %11 = arith.mulf %10, %10 : vector<8x32xf32>
    %12 = vector.broadcast %7 : vector<8x1xf32> to vector<8x32xf32>
    %13 = arith.mulf %12, %11 : vector<8x32xf32>
    %14 = arith.addf %1, %13 : vector<8x32xf32>
    %15 = tpu.iota {dimensions = array<i32: 0>} : vector<32x32xi32>
    %16 = tpu.iota {dimensions = array<i32: 1>} : vector<32x32xi32>
    %c1_i32 = arith.constant 1 : i32
    %17 = vector.broadcast %c1_i32 : i32 to vector<32x32xi32>
    %18 = arith.muli %17, %16 : vector<32x32xi32>
    %19 = arith.subi %15, %18 : vector<32x32xi32>
    %c-3_i32 = arith.constant -3 : i32
    %20 = vector.broadcast %c-3_i32 : i32 to vector<32x32xi32>
    %21 = arith.cmpi eq, %19, %20 : vector<32x32xi32>
    %22 = arith.extui %21 : vector<32x32xi1> to vector<32x32xi32>
    %23 = arith.sitofp %22 : vector<32x32xi32> to vector<32x32xf32>
    %cst_6 = arith.constant dense<0.000000e+00> : vector<8x32xf32>
    %24 = tpu.matmul %14, %23, %cst_6 {dimension_numbers = #tpu.dot_dimension_numbers<[1], [0], [0], [1], [0, 0, 1, 1], [], []>} : vector<8x32xf32>, vector<32x32xf32>, vector<8x32xf32> -> vector<8x32xf32>
    %c-2_i32 = arith.constant -2 : i32
    %25 = vector.broadcast %c-2_i32 : i32 to vector<32x32xi32>
    %26 = arith.cmpi eq, %19, %25 : vector<32x32xi32>
    %27 = arith.extui %26 : vector<32x32xi1> to vector<32x32xi32>
    %28 = arith.sitofp %27 : vector<32x32xi32> to vector<32x32xf32>
    %cst_7 = arith.constant dense<0.000000e+00> : vector<8x32xf32>
    %29 = tpu.matmul %14, %28, %cst_7 {dimension_numbers = #tpu.dot_dimension_numbers<[1], [0], [0], [1], [0, 0, 1, 1], [], []>} : vector<8x32xf32>, vector<32x32xf32>, vector<8x32xf32> -> vector<8x32xf32>
    %c-1_i32 = arith.constant -1 : i32
    %30 = vector.broadcast %c-1_i32 : i32 to vector<32x32xi32>
    %31 = arith.cmpi eq, %19, %30 : vector<32x32xi32>
    %32 = arith.extui %31 : vector<32x32xi1> to vector<32x32xi32>
    %33 = arith.sitofp %32 : vector<32x32xi32> to vector<32x32xf32>
    %cst_8 = arith.constant dense<0.000000e+00> : vector<8x32xf32>
    %34 = tpu.matmul %14, %33, %cst_8 {dimension_numbers = #tpu.dot_dimension_numbers<[1], [0], [0], [1], [0, 0, 1, 1], [], []>} : vector<8x32xf32>, vector<32x32xf32>, vector<8x32xf32> -> vector<8x32xf32>
    %c0_i32 = arith.constant 0 : i32
    %35 = vector.broadcast %c0_i32 : i32 to vector<32x32xi32>
    %36 = arith.cmpi eq, %19, %35 : vector<32x32xi32>
    %37 = arith.extui %36 : vector<32x32xi1> to vector<32x32xi32>
    %38 = arith.sitofp %37 : vector<32x32xi32> to vector<32x32xf32>
    %cst_9 = arith.constant dense<0.000000e+00> : vector<8x32xf32>
    %39 = tpu.matmul %14, %38, %cst_9 {dimension_numbers = #tpu.dot_dimension_numbers<[1], [0], [0], [1], [0, 0, 1, 1], [], []>} : vector<8x32xf32>, vector<32x32xf32>, vector<8x32xf32> -> vector<8x32xf32>
    %c1_i32_10 = arith.constant 1 : i32
    %40 = vector.broadcast %c1_i32_10 : i32 to vector<32x32xi32>
    %41 = arith.cmpi eq, %19, %40 : vector<32x32xi32>
    %42 = arith.extui %41 : vector<32x32xi1> to vector<32x32xi32>
    %43 = arith.sitofp %42 : vector<32x32xi32> to vector<32x32xf32>
    %cst_11 = arith.constant dense<0.000000e+00> : vector<8x32xf32>
    %44 = tpu.matmul %14, %43, %cst_11 {dimension_numbers = #tpu.dot_dimension_numbers<[1], [0], [0], [1], [0, 0, 1, 1], [], []>} : vector<8x32xf32>, vector<32x32xf32>, vector<8x32xf32> -> vector<8x32xf32>
    %c2_i32 = arith.constant 2 : i32
    %45 = vector.broadcast %c2_i32 : i32 to vector<32x32xi32>
    %46 = arith.cmpi eq, %19, %45 : vector<32x32xi32>
    %47 = arith.extui %46 : vector<32x32xi1> to vector<32x32xi32>
    %48 = arith.sitofp %47 : vector<32x32xi32> to vector<32x32xf32>
    %cst_12 = arith.constant dense<0.000000e+00> : vector<8x32xf32>
    %49 = tpu.matmul %14, %48, %cst_12 {dimension_numbers = #tpu.dot_dimension_numbers<[1], [0], [0], [1], [0, 0, 1, 1], [], []>} : vector<8x32xf32>, vector<32x32xf32>, vector<8x32xf32> -> vector<8x32xf32>
    %c3_i32 = arith.constant 3 : i32
    %50 = vector.broadcast %c3_i32 : i32 to vector<32x32xi32>
    %51 = arith.cmpi eq, %19, %50 : vector<32x32xi32>
    %52 = arith.extui %51 : vector<32x32xi1> to vector<32x32xi32>
    %53 = arith.sitofp %52 : vector<32x32xi32> to vector<32x32xf32>
    %cst_13 = arith.constant dense<0.000000e+00> : vector<8x32xf32>
    %54 = tpu.matmul %14, %53, %cst_13 {dimension_numbers = #tpu.dot_dimension_numbers<[1], [0], [0], [1], [0, 0, 1, 1], [], []>} : vector<8x32xf32>, vector<32x32xf32>, vector<8x32xf32> -> vector<8x32xf32>
    %55 = tpu.concatenate %24, %29, %34, %39, %44, %49, %54 in 0 : vector<8x32xf32>, vector<8x32xf32>, vector<8x32xf32>, vector<8x32xf32>, vector<8x32xf32>, vector<8x32xf32>, vector<8x32xf32> -> vector<56x32xf32>
    %c0_14 = arith.constant 0 : index
    %c0_15 = arith.constant 0 : index
    %c0_16 = arith.constant 0 : index
    %56 = vector.load %arg3[%c0_14, %c0_15, %c0_16] : memref<3x8x56xf32, #tpu.memory_space<vmem>>, vector<1x8x56xf32>
    %57 = vector.shape_cast %56 : vector<1x8x56xf32> to vector<8x56xf32>
    %cst_17 = arith.constant dense<0.000000e+00> : vector<8x32xf32>
    %58 = tpu.matmul %57, %55, %cst_17 {dimension_numbers = #tpu.dot_dimension_numbers<[1], [0], [0], [1], [0, 0, 1, 1], [], []>} : vector<8x56xf32>, vector<56x32xf32>, vector<8x32xf32> -> vector<8x32xf32>
    %c0_18 = arith.constant 0 : index
    %c0_19 = arith.constant 0 : index
    %c0_20 = arith.constant 0 : index
    %59 = vector.load %arg4[%c0_18, %c0_19, %c0_20] : memref<3x8x1xf32, #tpu.memory_space<vmem>>, vector<1x8x1xf32>
    %60 = vector.shape_cast %59 : vector<1x8x1xf32> to vector<8x1xf32>
    %61 = vector.broadcast %60 : vector<8x1xf32> to vector<8x32xf32>
    %62 = arith.addf %58, %61 : vector<8x32xf32>
    %c0_21 = arith.constant 0 : index
    %c0_22 = arith.constant 0 : index
    %c0_23 = arith.constant 0 : index
    %63 = vector.load %arg5[%c0_21, %c0_22, %c0_23] : memref<3x8x1xf32, #tpu.memory_space<vmem>>, vector<1x8x1xf32>
    %64 = vector.shape_cast %63 : vector<1x8x1xf32> to vector<8x1xf32>
    %cst_24 = arith.constant 9.99999971E-10 : f32
    %65 = vector.broadcast %cst_24 : f32 to vector<8x1xf32>
    %66 = arith.addf %64, %65 : vector<8x1xf32>
    %cst_25 = arith.constant 1.000000e+00 : f32
    %67 = vector.broadcast %cst_25 : f32 to vector<8x1xf32>
    %68 = arith.divf %67, %66 : vector<8x1xf32>
    %69 = vector.broadcast %64 : vector<8x1xf32> to vector<8x32xf32>
    %70 = arith.mulf %69, %62 : vector<8x32xf32>
    %71 = math.sin %70 : vector<8x32xf32>
    %72 = arith.mulf %71, %71 : vector<8x32xf32>
    %73 = vector.broadcast %68 : vector<8x1xf32> to vector<8x32xf32>
    %74 = arith.mulf %73, %72 : vector<8x32xf32>
    %75 = arith.addf %62, %74 : vector<8x32xf32>
    %c0_26 = arith.constant 0 : index
    %c0_27 = arith.constant 0 : index
    %c0_28 = arith.constant 0 : index
    %76 = vector.load %arg6[%c0_26, %c0_27, %c0_28] : memref<3x8x8xf32, #tpu.memory_space<vmem>>, vector<1x8x8xf32>
    %77 = vector.shape_cast %76 : vector<1x8x8xf32> to vector<8x8xf32>
    %cst_29 = arith.constant dense<0.000000e+00> : vector<8x32xf32>
    %78 = tpu.matmul %77, %75, %cst_29 {dimension_numbers = #tpu.dot_dimension_numbers<[1], [0], [0], [1], [0, 0, 1, 1], [], []>} : vector<8x8xf32>, vector<8x32xf32>, vector<8x32xf32> -> vector<8x32xf32>
    %c0_30 = arith.constant 0 : index
    %c0_31 = arith.constant 0 : index
    %c0_32 = arith.constant 0 : index
    %79 = vector.load %arg7[%c0_30, %c0_31, %c0_32] : memref<3x8x1xf32, #tpu.memory_space<vmem>>, vector<1x8x1xf32>
    %80 = vector.shape_cast %79 : vector<1x8x1xf32> to vector<8x1xf32>
    %81 = vector.broadcast %80 : vector<8x1xf32> to vector<8x32xf32>
    %82 = arith.addf %78, %81 : vector<8x32xf32>
    %83 = arith.addf %82, %1 : vector<8x32xf32>
    %c1 = arith.constant 1 : index
    %c0_33 = arith.constant 0 : index
    %c0_34 = arith.constant 0 : index
    %84 = vector.load %arg2[%c1, %c0_33, %c0_34] : memref<3x8x1xf32, #tpu.memory_space<vmem>>, vector<1x8x1xf32>
    %85 = vector.shape_cast %84 : vector<1x8x1xf32> to vector<8x1xf32>
    %cst_35 = arith.constant 9.99999971E-10 : f32
    %86 = vector.broadcast %cst_35 : f32 to vector<8x1xf32>
    %87 = arith.addf %85, %86 : vector<8x1xf32>
    %cst_36 = arith.constant 1.000000e+00 : f32
    %88 = vector.broadcast %cst_36 : f32 to vector<8x1xf32>
    %89 = arith.divf %88, %87 : vector<8x1xf32>
    %90 = vector.broadcast %85 : vector<8x1xf32> to vector<8x32xf32>
    %91 = arith.mulf %90, %83 : vector<8x32xf32>
    %92 = math.sin %91 : vector<8x32xf32>
    %93 = arith.mulf %92, %92 : vector<8x32xf32>
    %94 = vector.broadcast %89 : vector<8x1xf32> to vector<8x32xf32>
    %95 = arith.mulf %94, %93 : vector<8x32xf32>
    %96 = arith.addf %83, %95 : vector<8x32xf32>
    %97 = tpu.iota {dimensions = array<i32: 0>} : vector<32x32xi32>
    %98 = tpu.iota {dimensions = array<i32: 1>} : vector<32x32xi32>
    %c1_i32_37 = arith.constant 1 : i32
    %99 = vector.broadcast %c1_i32_37 : i32 to vector<32x32xi32>
    %100 = arith.muli %99, %98 : vector<32x32xi32>
    %101 = arith.subi %97, %100 : vector<32x32xi32>
    %c-9_i32 = arith.constant -9 : i32
    %102 = vector.broadcast %c-9_i32 : i32 to vector<32x32xi32>
    %103 = arith.cmpi eq, %101, %102 : vector<32x32xi32>
    %104 = arith.extui %103 : vector<32x32xi1> to vector<32x32xi32>
    %105 = arith.sitofp %104 : vector<32x32xi32> to vector<32x32xf32>
    %cst_38 = arith.constant dense<0.000000e+00> : vector<8x32xf32>
    %106 = tpu.matmul %96, %105, %cst_38 {dimension_numbers = #tpu.dot_dimension_numbers<[1], [0], [0], [1], [0, 0, 1, 1], [], []>} : vector<8x32xf32>, vector<32x32xf32>, vector<8x32xf32> -> vector<8x32xf32>
    %c-6_i32 = arith.constant -6 : i32
    %107 = vector.broadcast %c-6_i32 : i32 to vector<32x32xi32>
    %108 = arith.cmpi eq, %101, %107 : vector<32x32xi32>
    %109 = arith.extui %108 : vector<32x32xi1> to vector<32x32xi32>
    %110 = arith.sitofp %109 : vector<32x32xi32> to vector<32x32xf32>
    %cst_39 = arith.constant dense<0.000000e+00> : vector<8x32xf32>
    %111 = tpu.matmul %96, %110, %cst_39 {dimension_numbers = #tpu.dot_dimension_numbers<[1], [0], [0], [1], [0, 0, 1, 1], [], []>} : vector<8x32xf32>, vector<32x32xf32>, vector<8x32xf32> -> vector<8x32xf32>
    %c-3_i32_40 = arith.constant -3 : i32
    %112 = vector.broadcast %c-3_i32_40 : i32 to vector<32x32xi32>
    %113 = arith.cmpi eq, %101, %112 : vector<32x32xi32>
    %114 = arith.extui %113 : vector<32x32xi1> to vector<32x32xi32>
    %115 = arith.sitofp %114 : vector<32x32xi32> to vector<32x32xf32>
    %cst_41 = arith.constant dense<0.000000e+00> : vector<8x32xf32>
    %116 = tpu.matmul %96, %115, %cst_41 {dimension_numbers = #tpu.dot_dimension_numbers<[1], [0], [0], [1], [0, 0, 1, 1], [], []>} : vector<8x32xf32>, vector<32x32xf32>, vector<8x32xf32> -> vector<8x32xf32>
    %c0_i32_42 = arith.constant 0 : i32
    %117 = vector.broadcast %c0_i32_42 : i32 to vector<32x32xi32>
    %118 = arith.cmpi eq, %101, %117 : vector<32x32xi32>
    %119 = arith.extui %118 : vector<32x32xi1> to vector<32x32xi32>
    %120 = arith.sitofp %119 : vector<32x32xi32> to vector<32x32xf32>
    %cst_43 = arith.constant dense<0.000000e+00> : vector<8x32xf32>
    %121 = tpu.matmul %96, %120, %cst_43 {dimension_numbers = #tpu.dot_dimension_numbers<[1], [0], [0], [1], [0, 0, 1, 1], [], []>} : vector<8x32xf32>, vector<32x32xf32>, vector<8x32xf32> -> vector<8x32xf32>
    %c3_i32_44 = arith.constant 3 : i32
    %122 = vector.broadcast %c3_i32_44 : i32 to vector<32x32xi32>
    %123 = arith.cmpi eq, %101, %122 : vector<32x32xi32>
    %124 = arith.extui %123 : vector<32x32xi1> to vector<32x32xi32>
    %125 = arith.sitofp %124 : vector<32x32xi32> to vector<32x32xf32>
    %cst_45 = arith.constant dense<0.000000e+00> : vector<8x32xf32>
    %126 = tpu.matmul %96, %125, %cst_45 {dimension_numbers = #tpu.dot_dimension_numbers<[1], [0], [0], [1], [0, 0, 1, 1], [], []>} : vector<8x32xf32>, vector<32x32xf32>, vector<8x32xf32> -> vector<8x32xf32>
    %c6_i32 = arith.constant 6 : i32
    %127 = vector.broadcast %c6_i32 : i32 to vector<32x32xi32>
    %128 = arith.cmpi eq, %101, %127 : vector<32x32xi32>
    %129 = arith.extui %128 : vector<32x32xi1> to vector<32x32xi32>
    %130 = arith.sitofp %129 : vector<32x32xi32> to vector<32x32xf32>
    %cst_46 = arith.constant dense<0.000000e+00> : vector<8x32xf32>
    %131 = tpu.matmul %96, %130, %cst_46 {dimension_numbers = #tpu.dot_dimension_numbers<[1], [0], [0], [1], [0, 0, 1, 1], [], []>} : vector<8x32xf32>, vector<32x32xf32>, vector<8x32xf32> -> vector<8x32xf32>
    %c9_i32 = arith.constant 9 : i32
    %132 = vector.broadcast %c9_i32 : i32 to vector<32x32xi32>
    %133 = arith.cmpi eq, %101, %132 : vector<32x32xi32>
    %134 = arith.extui %133 : vector<32x32xi1> to vector<32x32xi32>
    %135 = arith.sitofp %134 : vector<32x32xi32> to vector<32x32xf32>
    %cst_47 = arith.constant dense<0.000000e+00> : vector<8x32xf32>
    %136 = tpu.matmul %96, %135, %cst_47 {dimension_numbers = #tpu.dot_dimension_numbers<[1], [0], [0], [1], [0, 0, 1, 1], [], []>} : vector<8x32xf32>, vector<32x32xf32>, vector<8x32xf32> -> vector<8x32xf32>
    %137 = tpu.concatenate %106, %111, %116, %121, %126, %131, %136 in 0 : vector<8x32xf32>, vector<8x32xf32>, vector<8x32xf32>, vector<8x32xf32>, vector<8x32xf32>, vector<8x32xf32>, vector<8x32xf32> -> vector<56x32xf32>
    %c1_48 = arith.constant 1 : index
    %c0_49 = arith.constant 0 : index
    %c0_50 = arith.constant 0 : index
    %138 = vector.load %arg3[%c1_48, %c0_49, %c0_50] : memref<3x8x56xf32, #tpu.memory_space<vmem>>, vector<1x8x56xf32>
    %139 = vector.shape_cast %138 : vector<1x8x56xf32> to vector<8x56xf32>
    %cst_51 = arith.constant dense<0.000000e+00> : vector<8x32xf32>
    %140 = tpu.matmul %139, %137, %cst_51 {dimension_numbers = #tpu.dot_dimension_numbers<[1], [0], [0], [1], [0, 0, 1, 1], [], []>} : vector<8x56xf32>, vector<56x32xf32>, vector<8x32xf32> -> vector<8x32xf32>
    %c1_52 = arith.constant 1 : index
    %c0_53 = arith.constant 0 : index
    %c0_54 = arith.constant 0 : index
    %141 = vector.load %arg4[%c1_52, %c0_53, %c0_54] : memref<3x8x1xf32, #tpu.memory_space<vmem>>, vector<1x8x1xf32>
    %142 = vector.shape_cast %141 : vector<1x8x1xf32> to vector<8x1xf32>
    %143 = vector.broadcast %142 : vector<8x1xf32> to vector<8x32xf32>
    %144 = arith.addf %140, %143 : vector<8x32xf32>
    %c1_55 = arith.constant 1 : index
    %c0_56 = arith.constant 0 : index
    %c0_57 = arith.constant 0 : index
    %145 = vector.load %arg5[%c1_55, %c0_56, %c0_57] : memref<3x8x1xf32, #tpu.memory_space<vmem>>, vector<1x8x1xf32>
    %146 = vector.shape_cast %145 : vector<1x8x1xf32> to vector<8x1xf32>
    %cst_58 = arith.constant 9.99999971E-10 : f32
    %147 = vector.broadcast %cst_58 : f32 to vector<8x1xf32>
    %148 = arith.addf %146, %147 : vector<8x1xf32>
    %cst_59 = arith.constant 1.000000e+00 : f32
    %149 = vector.broadcast %cst_59 : f32 to vector<8x1xf32>
    %150 = arith.divf %149, %148 : vector<8x1xf32>
    %151 = vector.broadcast %146 : vector<8x1xf32> to vector<8x32xf32>
    %152 = arith.mulf %151, %144 : vector<8x32xf32>
    %153 = math.sin %152 : vector<8x32xf32>
    %154 = arith.mulf %153, %153 : vector<8x32xf32>
    %155 = vector.broadcast %150 : vector<8x1xf32> to vector<8x32xf32>
    %156 = arith.mulf %155, %154 : vector<8x32xf32>
    %157 = arith.addf %144, %156 : vector<8x32xf32>
    %c1_60 = arith.constant 1 : index
    %c0_61 = arith.constant 0 : index
    %c0_62 = arith.constant 0 : index
    %158 = vector.load %arg6[%c1_60, %c0_61, %c0_62] : memref<3x8x8xf32, #tpu.memory_space<vmem>>, vector<1x8x8xf32>
    %159 = vector.shape_cast %158 : vector<1x8x8xf32> to vector<8x8xf32>
    %cst_63 = arith.constant dense<0.000000e+00> : vector<8x32xf32>
    %160 = tpu.matmul %159, %157, %cst_63 {dimension_numbers = #tpu.dot_dimension_numbers<[1], [0], [0], [1], [0, 0, 1, 1], [], []>} : vector<8x8xf32>, vector<8x32xf32>, vector<8x32xf32> -> vector<8x32xf32>
    %c1_64 = arith.constant 1 : index
    %c0_65 = arith.constant 0 : index
    %c0_66 = arith.constant 0 : index
    %161 = vector.load %arg7[%c1_64, %c0_65, %c0_66] : memref<3x8x1xf32, #tpu.memory_space<vmem>>, vector<1x8x1xf32>
    %162 = vector.shape_cast %161 : vector<1x8x1xf32> to vector<8x1xf32>
    %163 = vector.broadcast %162 : vector<8x1xf32> to vector<8x32xf32>
    %164 = arith.addf %160, %163 : vector<8x32xf32>
    %165 = arith.addf %164, %83 : vector<8x32xf32>
    %c2 = arith.constant 2 : index
    %c0_67 = arith.constant 0 : index
    %c0_68 = arith.constant 0 : index
    %166 = vector.load %arg2[%c2, %c0_67, %c0_68] : memref<3x8x1xf32, #tpu.memory_space<vmem>>, vector<1x8x1xf32>
    %167 = vector.shape_cast %166 : vector<1x8x1xf32> to vector<8x1xf32>
    %cst_69 = arith.constant 9.99999971E-10 : f32
    %168 = vector.broadcast %cst_69 : f32 to vector<8x1xf32>
    %169 = arith.addf %167, %168 : vector<8x1xf32>
    %cst_70 = arith.constant 1.000000e+00 : f32
    %170 = vector.broadcast %cst_70 : f32 to vector<8x1xf32>
    %171 = arith.divf %170, %169 : vector<8x1xf32>
    %172 = vector.broadcast %167 : vector<8x1xf32> to vector<8x32xf32>
    %173 = arith.mulf %172, %165 : vector<8x32xf32>
    %174 = math.sin %173 : vector<8x32xf32>
    %175 = arith.mulf %174, %174 : vector<8x32xf32>
    %176 = vector.broadcast %171 : vector<8x1xf32> to vector<8x32xf32>
    %177 = arith.mulf %176, %175 : vector<8x32xf32>
    %178 = arith.addf %165, %177 : vector<8x32xf32>
    %179 = tpu.iota {dimensions = array<i32: 0>} : vector<32x32xi32>
    %180 = tpu.iota {dimensions = array<i32: 1>} : vector<32x32xi32>
    %c1_i32_71 = arith.constant 1 : i32
    %181 = vector.broadcast %c1_i32_71 : i32 to vector<32x32xi32>
    %182 = arith.muli %181, %180 : vector<32x32xi32>
    %183 = arith.subi %179, %182 : vector<32x32xi32>
    %c-27_i32 = arith.constant -27 : i32
    %184 = vector.broadcast %c-27_i32 : i32 to vector<32x32xi32>
    %185 = arith.cmpi eq, %183, %184 : vector<32x32xi32>
    %186 = arith.extui %185 : vector<32x32xi1> to vector<32x32xi32>
    %187 = arith.sitofp %186 : vector<32x32xi32> to vector<32x32xf32>
    %cst_72 = arith.constant dense<0.000000e+00> : vector<8x32xf32>
    %188 = tpu.matmul %178, %187, %cst_72 {dimension_numbers = #tpu.dot_dimension_numbers<[1], [0], [0], [1], [0, 0, 1, 1], [], []>} : vector<8x32xf32>, vector<32x32xf32>, vector<8x32xf32> -> vector<8x32xf32>
    %c-18_i32 = arith.constant -18 : i32
    %189 = vector.broadcast %c-18_i32 : i32 to vector<32x32xi32>
    %190 = arith.cmpi eq, %183, %189 : vector<32x32xi32>
    %191 = arith.extui %190 : vector<32x32xi1> to vector<32x32xi32>
    %192 = arith.sitofp %191 : vector<32x32xi32> to vector<32x32xf32>
    %cst_73 = arith.constant dense<0.000000e+00> : vector<8x32xf32>
    %193 = tpu.matmul %178, %192, %cst_73 {dimension_numbers = #tpu.dot_dimension_numbers<[1], [0], [0], [1], [0, 0, 1, 1], [], []>} : vector<8x32xf32>, vector<32x32xf32>, vector<8x32xf32> -> vector<8x32xf32>
    %c-9_i32_74 = arith.constant -9 : i32
    %194 = vector.broadcast %c-9_i32_74 : i32 to vector<32x32xi32>
    %195 = arith.cmpi eq, %183, %194 : vector<32x32xi32>
    %196 = arith.extui %195 : vector<32x32xi1> to vector<32x32xi32>
    %197 = arith.sitofp %196 : vector<32x32xi32> to vector<32x32xf32>
    %cst_75 = arith.constant dense<0.000000e+00> : vector<8x32xf32>
    %198 = tpu.matmul %178, %197, %cst_75 {dimension_numbers = #tpu.dot_dimension_numbers<[1], [0], [0], [1], [0, 0, 1, 1], [], []>} : vector<8x32xf32>, vector<32x32xf32>, vector<8x32xf32> -> vector<8x32xf32>
    %c0_i32_76 = arith.constant 0 : i32
    %199 = vector.broadcast %c0_i32_76 : i32 to vector<32x32xi32>
    %200 = arith.cmpi eq, %183, %199 : vector<32x32xi32>
    %201 = arith.extui %200 : vector<32x32xi1> to vector<32x32xi32>
    %202 = arith.sitofp %201 : vector<32x32xi32> to vector<32x32xf32>
    %cst_77 = arith.constant dense<0.000000e+00> : vector<8x32xf32>
    %203 = tpu.matmul %178, %202, %cst_77 {dimension_numbers = #tpu.dot_dimension_numbers<[1], [0], [0], [1], [0, 0, 1, 1], [], []>} : vector<8x32xf32>, vector<32x32xf32>, vector<8x32xf32> -> vector<8x32xf32>
    %c9_i32_78 = arith.constant 9 : i32
    %204 = vector.broadcast %c9_i32_78 : i32 to vector<32x32xi32>
    %205 = arith.cmpi eq, %183, %204 : vector<32x32xi32>
    %206 = arith.extui %205 : vector<32x32xi1> to vector<32x32xi32>
    %207 = arith.sitofp %206 : vector<32x32xi32> to vector<32x32xf32>
    %cst_79 = arith.constant dense<0.000000e+00> : vector<8x32xf32>
    %208 = tpu.matmul %178, %207, %cst_79 {dimension_numbers = #tpu.dot_dimension_numbers<[1], [0], [0], [1], [0, 0, 1, 1], [], []>} : vector<8x32xf32>, vector<32x32xf32>, vector<8x32xf32> -> vector<8x32xf32>
    %c18_i32 = arith.constant 18 : i32
    %209 = vector.broadcast %c18_i32 : i32 to vector<32x32xi32>
    %210 = arith.cmpi eq, %183, %209 : vector<32x32xi32>
    %211 = arith.extui %210 : vector<32x32xi1> to vector<32x32xi32>
    %212 = arith.sitofp %211 : vector<32x32xi32> to vector<32x32xf32>
    %cst_80 = arith.constant dense<0.000000e+00> : vector<8x32xf32>
    %213 = tpu.matmul %178, %212, %cst_80 {dimension_numbers = #tpu.dot_dimension_numbers<[1], [0], [0], [1], [0, 0, 1, 1], [], []>} : vector<8x32xf32>, vector<32x32xf32>, vector<8x32xf32> -> vector<8x32xf32>
    %c27_i32 = arith.constant 27 : i32
    %214 = vector.broadcast %c27_i32 : i32 to vector<32x32xi32>
    %215 = arith.cmpi eq, %183, %214 : vector<32x32xi32>
    %216 = arith.extui %215 : vector<32x32xi1> to vector<32x32xi32>
    %217 = arith.sitofp %216 : vector<32x32xi32> to vector<32x32xf32>
    %cst_81 = arith.constant dense<0.000000e+00> : vector<8x32xf32>
    %218 = tpu.matmul %178, %217, %cst_81 {dimension_numbers = #tpu.dot_dimension_numbers<[1], [0], [0], [1], [0, 0, 1, 1], [], []>} : vector<8x32xf32>, vector<32x32xf32>, vector<8x32xf32> -> vector<8x32xf32>
    %219 = tpu.concatenate %188, %193, %198, %203, %208, %213, %218 in 0 : vector<8x32xf32>, vector<8x32xf32>, vector<8x32xf32>, vector<8x32xf32>, vector<8x32xf32>, vector<8x32xf32>, vector<8x32xf32> -> vector<56x32xf32>
    %c2_82 = arith.constant 2 : index
    %c0_83 = arith.constant 0 : index
    %c0_84 = arith.constant 0 : index
    %220 = vector.load %arg3[%c2_82, %c0_83, %c0_84] : memref<3x8x56xf32, #tpu.memory_space<vmem>>, vector<1x8x56xf32>
    %221 = vector.shape_cast %220 : vector<1x8x56xf32> to vector<8x56xf32>
    %cst_85 = arith.constant dense<0.000000e+00> : vector<8x32xf32>
    %222 = tpu.matmul %221, %219, %cst_85 {dimension_numbers = #tpu.dot_dimension_numbers<[1], [0], [0], [1], [0, 0, 1, 1], [], []>} : vector<8x56xf32>, vector<56x32xf32>, vector<8x32xf32> -> vector<8x32xf32>
    %c2_86 = arith.constant 2 : index
    %c0_87 = arith.constant 0 : index
    %c0_88 = arith.constant 0 : index
    %223 = vector.load %arg4[%c2_86, %c0_87, %c0_88] : memref<3x8x1xf32, #tpu.memory_space<vmem>>, vector<1x8x1xf32>
    %224 = vector.shape_cast %223 : vector<1x8x1xf32> to vector<8x1xf32>
    %225 = vector.broadcast %224 : vector<8x1xf32> to vector<8x32xf32>
    %226 = arith.addf %222, %225 : vector<8x32xf32>
    %c2_89 = arith.constant 2 : index
    %c0_90 = arith.constant 0 : index
    %c0_91 = arith.constant 0 : index
    %227 = vector.load %arg5[%c2_89, %c0_90, %c0_91] : memref<3x8x1xf32, #tpu.memory_space<vmem>>, vector<1x8x1xf32>
    %228 = vector.shape_cast %227 : vector<1x8x1xf32> to vector<8x1xf32>
    %cst_92 = arith.constant 9.99999971E-10 : f32
    %229 = vector.broadcast %cst_92 : f32 to vector<8x1xf32>
    %230 = arith.addf %228, %229 : vector<8x1xf32>
    %cst_93 = arith.constant 1.000000e+00 : f32
    %231 = vector.broadcast %cst_93 : f32 to vector<8x1xf32>
    %232 = arith.divf %231, %230 : vector<8x1xf32>
    %233 = vector.broadcast %228 : vector<8x1xf32> to vector<8x32xf32>
    %234 = arith.mulf %233, %226 : vector<8x32xf32>
    %235 = math.sin %234 : vector<8x32xf32>
    %236 = arith.mulf %235, %235 : vector<8x32xf32>
    %237 = vector.broadcast %232 : vector<8x1xf32> to vector<8x32xf32>
    %238 = arith.mulf %237, %236 : vector<8x32xf32>
    %239 = arith.addf %226, %238 : vector<8x32xf32>
    %c2_94 = arith.constant 2 : index
    %c0_95 = arith.constant 0 : index
    %c0_96 = arith.constant 0 : index
    %240 = vector.load %arg6[%c2_94, %c0_95, %c0_96] : memref<3x8x8xf32, #tpu.memory_space<vmem>>, vector<1x8x8xf32>
    %241 = vector.shape_cast %240 : vector<1x8x8xf32> to vector<8x8xf32>
    %cst_97 = arith.constant dense<0.000000e+00> : vector<8x32xf32>
    %242 = tpu.matmul %241, %239, %cst_97 {dimension_numbers = #tpu.dot_dimension_numbers<[1], [0], [0], [1], [0, 0, 1, 1], [], []>} : vector<8x8xf32>, vector<8x32xf32>, vector<8x32xf32> -> vector<8x32xf32>
    %c2_98 = arith.constant 2 : index
    %c0_99 = arith.constant 0 : index
    %c0_100 = arith.constant 0 : index
    %243 = vector.load %arg7[%c2_98, %c0_99, %c0_100] : memref<3x8x1xf32, #tpu.memory_space<vmem>>, vector<1x8x1xf32>
    %244 = vector.shape_cast %243 : vector<1x8x1xf32> to vector<8x1xf32>
    %245 = vector.broadcast %244 : vector<8x1xf32> to vector<8x32xf32>
    %246 = arith.addf %242, %245 : vector<8x32xf32>
    %247 = arith.addf %246, %165 : vector<8x32xf32>
    %c0_101 = arith.constant 0 : index
    %c0_102 = arith.constant 0 : index
    %248 = vector.load %arg8[%c0_101, %c0_102] : memref<8x1xf32, #tpu.memory_space<vmem>>, vector<8x1xf32>
    %cst_103 = arith.constant 9.99999971E-10 : f32
    %249 = vector.broadcast %cst_103 : f32 to vector<8x1xf32>
    %250 = arith.addf %248, %249 : vector<8x1xf32>
    %cst_104 = arith.constant 1.000000e+00 : f32
    %251 = vector.broadcast %cst_104 : f32 to vector<8x1xf32>
    %252 = arith.divf %251, %250 : vector<8x1xf32>
    %253 = vector.broadcast %248 : vector<8x1xf32> to vector<8x32xf32>
    %254 = arith.mulf %253, %247 : vector<8x32xf32>
    %255 = math.sin %254 : vector<8x32xf32>
    %256 = arith.mulf %255, %255 : vector<8x32xf32>
    %257 = vector.broadcast %252 : vector<8x1xf32> to vector<8x32xf32>
    %258 = arith.mulf %257, %256 : vector<8x32xf32>
    %259 = arith.addf %247, %258 : vector<8x32xf32>
    %260 = tpu.iota {dimensions = array<i32: 0>} : vector<32x16xi32>
    %261 = tpu.iota {dimensions = array<i32: 1>} : vector<32x16xi32>
    %c2_i32_105 = arith.constant 2 : i32
    %262 = vector.broadcast %c2_i32_105 : i32 to vector<32x16xi32>
    %263 = arith.muli %262, %261 : vector<32x16xi32>
    %264 = arith.subi %260, %263 : vector<32x16xi32>
    %c-1_i32_106 = arith.constant -1 : i32
    %265 = vector.broadcast %c-1_i32_106 : i32 to vector<32x16xi32>
    %266 = arith.cmpi eq, %264, %265 : vector<32x16xi32>
    %267 = arith.extui %266 : vector<32x16xi1> to vector<32x16xi32>
    %268 = arith.sitofp %267 : vector<32x16xi32> to vector<32x16xf32>
    %cst_107 = arith.constant dense<0.000000e+00> : vector<8x16xf32>
    %269 = tpu.matmul %259, %268, %cst_107 {dimension_numbers = #tpu.dot_dimension_numbers<[1], [0], [0], [1], [0, 0, 1, 1], [], []>} : vector<8x32xf32>, vector<32x16xf32>, vector<8x16xf32> -> vector<8x16xf32>
    %c0_i32_108 = arith.constant 0 : i32
    %270 = vector.broadcast %c0_i32_108 : i32 to vector<32x16xi32>
    %271 = arith.cmpi eq, %264, %270 : vector<32x16xi32>
    %272 = arith.extui %271 : vector<32x16xi1> to vector<32x16xi32>
    %273 = arith.sitofp %272 : vector<32x16xi32> to vector<32x16xf32>
    %cst_109 = arith.constant dense<0.000000e+00> : vector<8x16xf32>
    %274 = tpu.matmul %259, %273, %cst_109 {dimension_numbers = #tpu.dot_dimension_numbers<[1], [0], [0], [1], [0, 0, 1, 1], [], []>} : vector<8x32xf32>, vector<32x16xf32>, vector<8x16xf32> -> vector<8x16xf32>
    %c1_i32_110 = arith.constant 1 : i32
    %275 = vector.broadcast %c1_i32_110 : i32 to vector<32x16xi32>
    %276 = arith.cmpi eq, %264, %275 : vector<32x16xi32>
    %277 = arith.extui %276 : vector<32x16xi1> to vector<32x16xi32>
    %278 = arith.sitofp %277 : vector<32x16xi32> to vector<32x16xf32>
    %cst_111 = arith.constant dense<0.000000e+00> : vector<8x16xf32>
    %279 = tpu.matmul %259, %278, %cst_111 {dimension_numbers = #tpu.dot_dimension_numbers<[1], [0], [0], [1], [0, 0, 1, 1], [], []>} : vector<8x32xf32>, vector<32x16xf32>, vector<8x16xf32> -> vector<8x16xf32>
    %c2_i32_112 = arith.constant 2 : i32
    %280 = vector.broadcast %c2_i32_112 : i32 to vector<32x16xi32>
    %281 = arith.cmpi eq, %264, %280 : vector<32x16xi32>
    %282 = arith.extui %281 : vector<32x16xi1> to vector<32x16xi32>
    %283 = arith.sitofp %282 : vector<32x16xi32> to vector<32x16xf32>
    %cst_113 = arith.constant dense<0.000000e+00> : vector<8x16xf32>
    %284 = tpu.matmul %259, %283, %cst_113 {dimension_numbers = #tpu.dot_dimension_numbers<[1], [0], [0], [1], [0, 0, 1, 1], [], []>} : vector<8x32xf32>, vector<32x16xf32>, vector<8x16xf32> -> vector<8x16xf32>
    %285 = tpu.concatenate %269, %274, %279, %284 in 0 : vector<8x16xf32>, vector<8x16xf32>, vector<8x16xf32>, vector<8x16xf32> -> vector<32x16xf32>
    %c0_114 = arith.constant 0 : index
    %c0_115 = arith.constant 0 : index
    %286 = vector.load %arg9[%c0_114, %c0_115] : memref<16x32xf32, #tpu.memory_space<vmem>>, vector<16x32xf32>
    %cst_116 = arith.constant dense<0.000000e+00> : vector<16x16xf32>
    %287 = tpu.matmul %286, %285, %cst_116 {dimension_numbers = #tpu.dot_dimension_numbers<[1], [0], [0], [1], [0, 0, 1, 1], [], []>} : vector<16x32xf32>, vector<32x16xf32>, vector<16x16xf32> -> vector<16x16xf32>
    %c0_117 = arith.constant 0 : index
    %c0_118 = arith.constant 0 : index
    %288 = vector.load %arg10[%c0_117, %c0_118] : memref<16x1xf32, #tpu.memory_space<vmem>>, vector<16x1xf32>
    %289 = vector.broadcast %288 : vector<16x1xf32> to vector<16x16xf32>
    %290 = arith.addf %287, %289 : vector<16x16xf32>
    %c0_119 = arith.constant 0 : index
    %c0_120 = arith.constant 0 : index
    %c0_121 = arith.constant 0 : index
    %291 = vector.load %arg11[%c0_119, %c0_120, %c0_121] : memref<1x16x16xf32, #tpu.memory_space<vmem>>, vector<1x16x16xf32>
    %292 = vector.shape_cast %291 : vector<1x16x16xf32> to vector<16x16xf32>
    %293 = vector.shape_cast %290 : vector<16x16xf32> to vector<1x16x16xf32>
    tpu.vector_store %arg11[%c0_119, %c0_120, %c0_121], %293 {strides = array<i32>} : memref<1x16x16xf32, #tpu.memory_space<vmem>>, vector<1x16x16xf32>,
    return
  }
  func.func @transform_0(%arg0: i32) -> (i32, i32, i32) {
    %c0_i32 = arith.constant 0 : i32
    %c0_i32_0 = arith.constant 0 : i32
    %c0_i32_1 = arith.constant 0 : i32
    return %arg0, %c0_i32, %c0_i32_0 : i32, i32, i32
  }
  func.func @transform_1(%arg0: i32) -> (i32, i32, i32) {
    %c0_i32 = arith.constant 0 : i32
    %c0_i32_0 = arith.constant 0 : i32
    %c0_i32_1 = arith.constant 0 : i32
    %c0_i32_2 = arith.constant 0 : i32
    return %c0_i32, %c0_i32_0, %c0_i32_1 : i32, i32, i32
  }
  func.func @transform_2(%arg0: i32) -> (i32, i32, i32) {
    %c0_i32 = arith.constant 0 : i32
    %c0_i32_0 = arith.constant 0 : i32
    %c0_i32_1 = arith.constant 0 : i32
    %c0_i32_2 = arith.constant 0 : i32
    return %c0_i32, %c0_i32_0, %c0_i32_1 : i32, i32, i32
  }
  func.func @transform_3(%arg0: i32) -> (i32, i32, i32) {
    %c0_i32 = arith.constant 0 : i32
    %c0_i32_0 = arith.constant 0 : i32
    %c0_i32_1 = arith.constant 0 : i32
    %c0_i32_2 = arith.constant 0 : i32
    return %c0_i32, %c0_i32_0, %c0_i32_1 : i32, i32, i32
  }
  func.func @transform_4(%arg0: i32) -> (i32, i32, i32) {
    %c0_i32 = arith.constant 0 : i32
    %c0_i32_0 = arith.constant 0 : i32
    %c0_i32_1 = arith.constant 0 : i32
    %c0_i32_2 = arith.constant 0 : i32
    return %c0_i32, %c0_i32_0, %c0_i32_1 : i32, i32, i32
  }
  func.func @transform_5(%arg0: i32) -> (i32, i32, i32) {
    %c0_i32 = arith.constant 0 : i32
    %c0_i32_0 = arith.constant 0 : i32
    %c0_i32_1 = arith.constant 0 : i32
    %c0_i32_2 = arith.constant 0 : i32
    return %c0_i32, %c0_i32_0, %c0_i32_1 : i32, i32, i32
  }
  func.func @transform_6(%arg0: i32) -> (i32, i32, i32) {
    %c0_i32 = arith.constant 0 : i32
    %c0_i32_0 = arith.constant 0 : i32
    %c0_i32_1 = arith.constant 0 : i32
    %c0_i32_2 = arith.constant 0 : i32
    return %c0_i32, %c0_i32_0, %c0_i32_1 : i32, i32, i32
  }
  func.func @transform_7(%arg0: i32) -> (i32, i32) {
    %c0_i32 = arith.constant 0 : i32
    %c0_i32_0 = arith.constant 0 : i32
    %c0_i32_1 = arith.constant 0 : i32
    return %c0_i32, %c0_i32_0 : i32, i32
  }
  func.func @transform_8(%arg0: i32) -> (i32, i32) {
    %c0_i32 = arith.constant 0 : i32
    %c0_i32_0 = arith.constant 0 : i32
    %c0_i32_1 = arith.constant 0 : i32
    return %c0_i32, %c0_i32_0 : i32, i32
  }
  func.func @transform_9(%arg0: i32) -> (i32, i32) {
    %c0_i32 = arith.constant 0 : i32
    %c0_i32_0 = arith.constant 0 : i32
    %c0_i32_1 = arith.constant 0 : i32
    return %c0_i32, %c0_i32_0 : i32, i32
  }
  func.func @transform_10(%arg0: i32) -> (i32, i32, i32) {
    %c0_i32 = arith.constant 0 : i32
    %c0_i32_0 = arith.constant 0 : i32
    %c0_i32_1 = arith.constant 0 : i32
    return %arg0, %c0_i32, %c0_i32_0 : i32, i32, i32
  }
}

</mosaic_0001>

<bundles_post_ra>
// kernel: tpu_custom_call.1
= control target key start
LH: loop header
LB: loop body
LE: loop exit
PB: predicated region body
PF: predicated region fallthrough
CT: control target
= control target key end

     0   :  { %15 = vsyncpa [#allocation3], 0  ;;  %s5958_s0 = inlined_call_operand.vmem [shape: f32[2,8,32], index: 0, kind: input, shape index: {}]   ;;  %s5959_s1 = inlined_call_operand.vmem [shape: f32[3,8,1], index: 1, kind: input, shape index: {}]   ;;  %s5960_s2 = inlined_call_operand.vmem [shape: f32[3,8,56], index: 2, kind: input, shape index: {}]   ;;  %s5961_s3 = inlined_call_operand.vmem [shape: f32[3,8,1], index: 3, kind: input, shape index: {}]   ;;  %s5962_s4 = inlined_call_operand.vmem [shape: f32[3,8,1], index: 4, kind: input, shape index: {}]   ;;  %s5963_s5 = inlined_call_operand.vmem [shape: f32[3,8,8], index: 5, kind: input, shape index: {}]   ;;  %s5964_s6 = inlined_call_operand.vmem [shape: f32[3,8,1], index: 6, kind: input, shape index: {}]   ;;  %s5965_s7 = inlined_call_operand.vmem [shape: f32[8,1], index: 7, kind: input, shape index: {}]   ;;  %s5966_s8 = inlined_call_operand.vmem [shape: f32[16,32], index: 8, kind: input, shape index: {}]   ;;  %s5967_s9 = inlined_call_operand.vmem [shape: f32[16,1], index: 9, kind: input, shape index: {}]   ;;  %s5968_s10 = inlined_call_operand.hbm [shape: f32[2,16,16], index: 10, kind: output, shape index: {}]  }
   0x1   :  { %17 = vsyncpa [#allocation3 + $0x1], 0  ;;  %s5096_s13 = smov 0   ;;  %s5098_s14 = smov 0  }
   0x2   :  { %s5100_s15 = smov 0   ;;  %s5102_s16 = smov 0  }
   0x3 LB: > { %s5117_s17 = sadd.s32 4294967295, %s5023_s16   ;;  %s3888_s18 = sadd.s32 4294967294, %s5023_s16   ;;  %s5023_s16 = sphi %s5102_s16, %s6038_s16   ;;  %s5019_s15 = sphi %s5100_s15, %s6037_s15   ;;  %s5015_s14 = sphi %s5098_s14, %s6036_s14   ;;  %s5011_s13 = sphi %s5096_s13, %s6035_s13  }
   0x4   : > { %s5121_s19 = sadd.s32 1, %s5023_s16   ;;  %s245_s20 = sadd.s32 1, %s5019_s15 }
   0x5   : > { %s242_s21 = ssub.s32 %s5023_s16, %s5121_s19  ;;  %p255_p0 = scmp.ne.s32.totalorder %s5019_s15, %s5015_s14 }
   0x6   : > { %p243_p1 = scmp.eq.s32.totalorder %s242_s21, 0  ;;  %p256_p2 = scmp.eq.s32.totalorder %s5117_s17, 1 }
   0x7   : > { %p261_p3 = scmp.ne.s32.totalorder %s5015_s14, %s5011_s13  ;;  %p262_p4 = scmp.eq.s32.totalorder %s3888_s18, 1 }
   0x8   : > { %s5132_s22 = scalar_select %p243_p1, %s5019_s15, %s245_s20  }
   0x9   : > { %p5134_p5 = por %p256_p2, %p255_p0  ;;  %p5138_p6 = por %p262_p4, %p261_p3 }
   0xa   : > { %p3891_p7 = scmp.ge.s32.totalorder %s5023_s16, 1  ;;  %p314_p8 = scmp.lt.s32.totalorder %s5023_s16, 3 }
   0xc   : > { %p315_p9 = pnand %p3891_p7, %p314_p8 }
   0xd   : > { %v356_v0 = vld [vmem:[%s5959_s1] sm:$0xff] (!%p315_p9)  ;;  %v5025_v2 = vmov (!%p315_p9), 0   ;;  %v5156_v5 = vld [vmem:[%s5962_s4 + $0x8] sm:$0xff] (!%p315_p9)  ;;  %v5168_v10 = vld [vmem:[%s5962_s4 + $0x10] sm:$0xff] (!%p315_p9)  ;;  %v478_v19 = vlaneseq (!%p315_p9)  ;;  %v5026_v27 = vmov (!%p315_p9), 0.0|0.0   ;;  %vm5969_vm12 = vmmov (!%p315_p9), 0  }
   0xe   : > { %318 = sbr.rel (%p315_p9) target bundleno = 3212 (0xc8c), region = 60  ;;  %v5150_v1 = vld [vmem:[%s5962_s4] sm:$0xff] (!%p315_p9)  ;;  %4917 = vset.pattern.permute.xlu0 (!%p315_p9), %v5025_v2  ;;  %v357_v3 = vadd.f32 (!%p315_p9), 1e-09, %v356_v0  ;;  %4918 = vset.pattern.permute.xlu1 (!%p315_p9), %v5025_v2  ;;  %v2100_v7 = vadd.f32 (!%p315_p9), 1e-09, %v5156_v5 }
   0xf   : > { %v1149_v4 = vadd.f32 (!%p315_p9), 1e-09, %v5150_v1  ;;  %362 = vperm.xlu0 (!%p315_p9), %4917, %v356_v0   ;;  %v5162_v9 = vld [vmem:[%s5959_s1 + $0x8] sm:$0xff] (!%p315_p9)  ;;  %v3052_v12 = vadd.f32 (!%p315_p9), 1e-09, %v5168_v10  ;;  %v5177_v14 = vld [vmem:[%s5959_s1 + $0x10] sm:$0xff] (!%p315_p9)  ;;  %4649 = vmatprep.subr.bf16.mxu0 (!%p315_p9), %v5026_v27 }
  0x10   : > { %4919 = vrcp.f32 (!%p315_p9), %v357_v3  ;;  %v4022_v11 = vld [vmem:[%s5961_s3 + $0x8] sm:$0xff] (!%p315_p9)  ;;  %v4078_v15 = vld [vmem:[%s5961_s3 + $0x10] sm:$0xff] (!%p315_p9)  ;;  %v5186_v17 = vld [vmem:[%s5965_s7] sm:$0xff] (!%p315_p9)  ;;  %v5192_v20 = vshrl.u32 (!%p315_p9), %v478_v19, 7  ;;  %v5197_v22 = vand.u32 (!%p315_p9), 127, %v478_v19  ;;  %4655 = vmatprep.subr.bf16.mxu1 (!%p315_p9), %v5026_v27  ;;  %v5029_v33 = vmov (!%p315_p9), 0.0  }
  0x11   : > { %4921 = vrcp.f32 (!%p315_p9), %v1149_v4  ;;  %v3716_v18 = vld [vmem:[%s5967_s9] sm:$0xff] (!%p315_p9)  ;;  %v5027_v31 = vmov (!%p315_p9), 1.0|1.0   ;;  %4305 = vmatprep.mubr.msk.f32.mxu0 (!%p315_p9), %vm5969_vm12, %v5029_v33  ;;  %4316 = vmatprep.mubr.msk.f32.mxu1 (!%p315_p9), %vm5969_vm12, %v5029_v33  ;;  %p351_p10 = scmp.lt.s32.totalorder (!%p315_p9), %s5117_s17, 1  ;;  %v5030_v47 = vmov (!%p315_p9), 683565275  }
  0x12   : > { %4923 = vrcp.f32 (!%p315_p9), %v2100_v7  ;;  %v5195_v21 = vadd.s32 (!%p315_p9), 8, %v5192_v20  ;;  %v5201_v23 = vsub.s32 (!%p315_p9), %v5192_v20, %v5197_v22  ;;  %v5208_v25 = vadd.s32 (!%p315_p9), 16, %v5192_v20  ;;  %s348_s12 = sand.u32 (!%p315_p9), 1, %s5015_s14   ;;  %s4135_s25 = sshll.u32 (!%p315_p9), %s5117_s17, 8 }
  0x13   : > { %4925 = vrcp.f32 (!%p315_p9), %v3052_v12  ;;  %v5211_v26 = vadd.s32 (!%p315_p9), 24, %v5192_v20  ;;  %v5031_v49 = vmov (!%p315_p9), 2475754826   ;;  %v5032_v52 = vmov (!%p315_p9), 2131351028   ;;  %s3892_s18 = sshll.u32 (!%p315_p9), %s348_s12, 4  ;;  %s5915_s28 = scalar_lea.hbm (!%p315_p9), %s5968_s10, %s4135_s25 }
  0x14   : > { %v5205_v24 = vsub.s32 (!%p315_p9), %v5195_v21, %v5197_v22  ;;  %vm489_vm0 = vcmp.eq.s32.totalorder (!%p315_p9), %v5201_v23, 4294967293  ;;  %vm575_vm2 = vcmp.eq.s32.totalorder (!%p315_p9), %v5201_v23, 4294967294  ;;  %v5221_v28 = vsub.s32 (!%p315_p9), %v5208_v25, %v5197_v22  ;;  %s5038_s30 = smov (!%p315_p9), [#allocation2]  }
  0x15   : > { %v5225_v29 = vsub.s32 %v5211_v26, %v5197_v22  ;;  %s352_s20 = scalar_select %p351_p10, %s5117_s17, 1  ;;  %v5033_v55 = vmov 2102212464   ;;  %v5034_v58 = vmov 920167782   ;;  %v5036_v30 = vmov 1.0  }
  0x16   : > { %vm490_vm1 = vcmp.eq.s32.totalorder %v5205_v24, 4294967293  ;;  %vm576_vm3 = vcmp.eq.s32.totalorder %v5205_v24, 4294967294  ;;  %vm491_vm6 = vcmp.eq.s32.totalorder %v5221_v28, 4294967293  ;;  %vm577_vm8 = vcmp.eq.s32.totalorder %v5221_v28, 4294967294  ;;  %s5917_s17 = scalar_lea.sflag [#allocation3], %s348_s12  ;;  %s4965_s11 = sshll.u32 %s5038_s30, 4  ;;  %s4966_s11 = int_to_ptr.vmem [resolvable:$false] %s4965_s11 }
  0x17   : > { %vm5227_vm4 = vmpackc.low %vm490_vm1, %vm489_vm0  ;;  %vm492_vm7 = vcmp.eq.s32.totalorder %v5225_v29, 4294967293  ;;  %vm578_vm9 = vcmp.eq.s32.totalorder %v5225_v29, 4294967294  ;;  %s3893_s21 = sshll.u32 %s352_s20, 3  ;;  %v5035_v61 = vmov 1326507024   ;;  %v5564_v32 = vpack.c.bf16 %v5036_v30, %v5029_v33  ;;  %s350_s20 = scalar_lea.vmem [#allocation2], %s3892_s18 }
  0x18   : > { %4651 = vmatpush3.bf16.msk.msra.mxu0 %vm5227_vm4, %v5027_v31  ;;  %vm4656_vm5 = vmpackc.low %vm576_vm3, %vm575_vm2  ;;  %s354_s27 = scalar_lea.vmem %s5958_s0, %s3893_s21  ;;  %s3826_s21 = sshll.u32 %s350_s20, 4  ;;  %s5910_s21 = int_to_ptr.vmem [resolvable:$true] %s3826_s21 }
  0x19   : > { %4657 = vmatpush3.bf16.msk.msra.mxu1 %vm4656_vm5, %v5027_v31  ;;  %4652 = vmatprep.subr.bf16.mxu0 %v5026_v27  ;;  %vm5241_vm10 = vmpackc.low %vm492_vm7, %vm491_vm6  ;;  %v5260_v34 = vld [vmem:[%s354_s27] sm:$0xff]  ;;  %s4961_s29 = scalar_lea.vmem %s5910_s21, 256  ;;  %s4967_s18 = scalar_lea.vmem %s4966_s11, 512 }
  0x1a   : > { %v4920_v6 = vpop.eup %4919  ;;  %4658 = vmatprep.subr.bf16.mxu1 %v5026_v27  ;;  %vm4659_vm11 = vmpackc.low %vm578_vm9, %vm577_vm8  ;;  %p4962_p11 = scmp.ne.s32.totalorder %s5910_s21, %s4961_s29  ;;  %p4968_p0 = scmp.lt.s32.totalorder %s5910_s21, %s4966_s11 }
  0x1b   : > { %473 = vperm.xlu0 %4917, %v4920_v6   ;;  %v4922_v8 = vpop.eup %4921  ;;  %p4969_p1 = scmp.lt.s32.totalorder %s4967_s18, %s4961_s29 }
  0x1c   : > { %v4924_v13 = vpop.eup %4923  ;;  %4654 = vmatpush3.bf16.msk.msra.mxu0 %vm5241_vm10, %v5027_v31  ;;  %p4963_p12 = pnand %p4962_p11, %p5134_p5 }
  0x1d   : > { %v4926_v16 = vpop.eup %4925  ;;  %4660 = vmatpush3.bf16.msk.msra.mxu1 %vm4659_vm11, %v5027_v31  ;;  %4661 = vmatprep.subr.bf16.mxu0 %v5026_v27  ;;  %p4970_p2 = por %p4969_p1, %p4968_p0 }
  0x1e   : > { %4667 = vmatprep.subr.bf16.mxu1 %v5026_v27  ;;  %p4964_p13 = pneg %p4963_p12 }
  0x1f   : > { %1265 = vperm.xlu0 %4917, %v4922_v8  }
  0x20   : > { %p4971_p3 = pnand %p4970_p2, %p4964_p13 }
  0x23   : > { %1359 = vperm.xlu0 %4917, %v5162_v9  }
  0x27   : > { %2022 = vperm.xlu0 %4917, %v4022_v11  }
  0x2b   : > { %2216 = vperm.xlu0 %4917, %v4924_v13  }
  0x2f   : > { %2311 = vperm.xlu0 %4917, %v5177_v14  }
  0x33   : > { %2974 = vperm.xlu0 %4917, %v4078_v15  }
  0x37   : > { %3168 = vperm.xlu0 %4917, %v4926_v16  }
  0x3b   : > { %3262 = vperm.xlu0 %4917, %v5186_v17  }
  0x3f   : > { %3720 = vperm.xlu0 %4917, %v3716_v18  }
  0x8e   : > { %v363_v35 = vpop.permute.xlu0 %362 }
  0x8f   : > { %v5263_v36 = vmul.f32 %v363_v35, %v5260_v34 }
  0x91   : > { %v369_v37 = vand.u32 2139095040, %v5263_v36  ;;  %v366_v41 = vand.u32 2147483647, %v5263_v36  ;;  %vm368_vm5 = vcmp.lt.s32.totalorder %v5263_v36, 0  ;;  %vm458_vm11 = vweird.f32 %v5263_v36 }
  0x93   : > { %v370_v38 = vshrl.u32 %v369_v37, 23  ;;  %v373_v44 = vand.u32 8388607, %v366_v41  ;;  %vm367_vm6 = vcmp.le.f32.partialorder %v366_v41, 0.7853982 }
  0x95   : > { %v3894_v39 = vadd.s32 4294967169, %v370_v38  ;;  %v374_v63 = vor.u32 8388608, %v373_v44 }
  0x97   : > { %v376_v40 = vadd.s32 1, %v3894_v39  ;;  %v414_v19 = vshll.u32 %v374_v63, 8 }
  0x99   : > { %vm377_vm13 = vcmp.gt.s32.totalorder %v376_v40, 0 }
  0x9a   : > { %v378_v42 = vsel %vm377_vm13, %v376_v40, 0  ;;  %vm657_vm13 = vcmp.eq.s32.totalorder %v5201_v23, 4294967295 }
  0x9b   : > { %v380_v43 = vand.u32 31, %v378_v42  ;;  %v379_v46 = vshrl.u32 %v378_v42, 5 }
  0x9d   : > { %v381_v45 = vsub.s32 32, %v380_v43  ;;  %v383_v48 = vshll.u32 %v5030_v47, %v380_v43  ;;  %v386_v50 = vshll.u32 %v5031_v49, %v380_v43  ;;  %v389_v54 = vshll.u32 %v5032_v52, %v380_v43 }
  0x9e   : > { %v392_v57 = vshll.u32 %v5033_v55, %v380_v43  ;;  %v395_v60 = vshll.u32 %v5034_v58, %v380_v43  ;;  %vm398_vm14 = vcmp.lt.s32.totalorder %v379_v46, 1  ;;  %vm401_vm15 = vcmp.lt.s32.totalorder %v379_v46, 4 }
  0x9f   : > { %v384_v51 = vshrl.u32 %v5031_v49, %v381_v45  ;;  %v387_v53 = vshrl.u32 %v5032_v52, %v381_v45  ;;  %v390_v56 = vshrl.u32 %v5033_v55, %v381_v45  ;;  %v393_v59 = vshrl.u32 %v5034_v58, %v381_v45 }
  0xa0   : > { %v396_v62 = vshrl.u32 %v5035_v61, %v381_v45  ;;  %v382_v12 = vshrl.u32 %v5030_v47, %v381_v45  ;;  %vm400_vm0 = vcmp.lt.s32.totalorder %v379_v46, 3  ;;  %vm399_vm1 = vcmp.lt.s32.totalorder %v379_v46, 2 }
  0xa1   : > { %v385_v0 = vor.u32 %v384_v51, %v383_v48  ;;  %v388_v2 = vor.u32 %v387_v53, %v386_v50  ;;  %v391_v3 = vor.u32 %v390_v56, %v389_v54  ;;  %v394_v4 = vor.u32 %v393_v59, %v392_v57 }
  0xa2   : > { %v397_v6 = vor.u32 %v396_v62, %v395_v60 }
  0xa3   : > { %v403_v7 = vsel %vm401_vm15, %v391_v3, 2102212464  ;;  %v406_v8 = vsel %vm398_vm14, %v385_v0, %v388_v2  ;;  %v410_v11 = vsel %vm398_vm14, %v388_v2, %v391_v3  ;;  %v407_v13 = vsel %vm401_vm15, %v394_v4, 920167782 }
  0xa4   : > { %v411_v15 = vsel %vm401_vm15, %v397_v6, 1326507024  ;;  %v408_v16 = vsel %vm400_vm0, %v391_v3, %v407_v13  ;;  %v402_v35 = vsel %vm398_vm14, %v382_v12, %v385_v0  ;;  %v404_v37 = vsel %vm400_vm0, %v388_v2, %v403_v7 }
  0xa5   : > { %v412_v18 = vsel %vm400_vm0, %v394_v4, %v411_v15  ;;  %v409_v38 = vsel %vm399_vm1, %v406_v8, %v408_v16  ;;  %v405_v48 = vsel %vm399_vm1, %v402_v35, %v404_v37  ;;  %vm658_vm14 = vcmp.eq.s32.totalorder %v5205_v24, 4294967295 }
  0xa6   : > { %v413_v39 = vsel %vm399_vm1, %v410_v11, %v412_v18  ;;  %v5283_v43 = vmul.u32.u64.low %v414_v19, %v409_v38  ;;  %v5284_v44 = vmul.u32.u64.high %v414_v19, %v409_v38, %v5283_v43  ;;  %v421_v50 = vmul.u32 %v414_v19, %v405_v48 }
  0xa7   : > { %v5280_v40 = vmul.u32.u64.low %v414_v19, %v413_v39  ;;  %v5281_v42 = vmul.u32.u64.high %v414_v19, %v413_v39, %v5280_v40  ;;  %vm739_vm15 = vcmp.eq.s32.totalorder %v5201_v23, 0  ;;  %vm740_vm0 = vcmp.eq.s32.totalorder %v5205_v24, 0 }
  0xa8   : > { %v424_v45 = vadd.s32 1, %v5284_v44  ;;  %vm5973_vm1 = vcmask 261120  }
  0xa9   : > { %vm423_vm2 = vc.u32 %v5281_v42, %v5283_v43  ;;  %v422_v2 = vadd.s32 %v5283_v43, %v5281_v42 }
  0xaa   : > { %v425_v46 = vsel %vm423_vm2, %v424_v45, %v5284_v44  ;;  %vm4662_vm2 = vmpackc.low %vm658_vm14, %vm657_vm13  ;;  %vm821_vm13 = vcmp.eq.s32.totalorder %v5201_v23, 1  ;;  %vm822_vm14 = vcmp.eq.s32.totalorder %v5205_v24, 1 }
  0xab   : > { %v426_v51 = vadd.s32 %v425_v46, %v421_v50 }
  0xad   : > { %v427_v53 = vadd.s32 536870912, %v426_v51 }
  0xaf   : > { %v428_v54 = vshrl.u32 %v427_v53, 30 }
  0xb1   : > { %v429_v56 = vshll.u32 %v428_v54, 30  ;;  %v452_v19 = vsub.s32 4, %v428_v54 }
  0xb3   : > { %v430_v57 = vsub.s32 %v426_v51, %v429_v56  ;;  %v453_v38 = vsel %vm368_vm5, %v452_v19, %v428_v54  ;;  %v474_v56 = vpop.permute.xlu0 %473 }
  0xb4   : > { %v455_v40 = vsel %vm367_vm6, 0, %v453_v38 }
  0xb5   : > { %v432_v59 = vsub.s32 0, %v430_v57  ;;  %v459_v42 = vadd.s32 3, %v455_v40 }
  0xb7   : > { %v3895_v60 = vmin.u32 %v432_v59, %v430_v57  ;;  %v460_v43 = vand.u32 3, %v459_v42 }
  0xb9   : > { %v434_v62 = vclz %v3895_v60  ;;  %vm465_vm7 = vcmp.eq.s32.totalorder %v460_v43, 2  ;;  %vm462_vm8 = vcmp.eq.s32.totalorder %v460_v43, 0  ;;  %vm461_vm9 = vcmp.lt.s32.totalorder %v460_v43, 2  ;;  %v1067_v43 = vld [vmem:[%s5960_s2] sm:$0xff] }
  0xbb   : > { %v3896_v63 = vadd.s32 4294967294, %v434_v62  ;;  %v6000_v62 = vmov 0 }
  0xbd   : > { %vm3897_vm3 = vcmp.lt.s32.totalorder %v3896_v63, 0 }
  0xbe   : > { %v437_v0 = vsel %vm3897_vm3, 0, %v3896_v63  ;;  %vm5300_vm3 = vmpackc.low %vm740_vm0, %vm739_vm15  ;;  %vm903_vm15 = vcmp.eq.s32.totalorder %v5201_v23, 2  ;;  %vm904_vm0 = vcmp.eq.s32.totalorder %v5205_v24, 2  ;;  %v6004_v63 = vmov 0 }
  0xbf   : > { %v438_v3 = vsub.s32 32, %v437_v0  ;;  %v442_v4 = vsub.s32 4294967266, %v437_v0  ;;  %v439_v6 = vshll.u32 %v430_v57, %v437_v0  ;;  %v1354_v0 = vadd.f32 1e-09, %v5162_v9  ;;  %v4030_v9 = vld [vmem:[%s5964_s6 + $0x8] sm:$0xff] }
  0xc1   : > { %v440_v7 = vshrl.u32 %v422_v2, %v438_v3  ;;  %v443_v8 = vadd.s32 127, %v442_v4  ;;  %v1068_v2 = vld [vmem:[%s5961_s3] sm:$0xff]  ;;  %v2306_v4 = vadd.f32 1e-09, %v5177_v14  ;;  %v4086_v14 = vld [vmem:[%s5964_s6 + $0x10] sm:$0xff] }
  0xc2   : > { %1071 = vperm.xlu1 %4918, %v1068_v2   ;;  %v1271_v3 = vld [vmem:[%s5964_s6] sm:$0xff] }
  0xc3   : > { %v441_v11 = vor.u32 %v440_v7, %v439_v6  ;;  %v444_v12 = vshll.u32 %v443_v8, 23  ;;  %v3257_v7 = vadd.f32 1e-09, %v5186_v17 }
  0xc5   : > { %v445_v13 = vor.u32 4788187, %v444_v12  ;;  %v448_v16 = vcvt.s32.f32 %v441_v11 }
  0xc6   : > { %1154 = vperm.xlu1 %4918, %v5150_v1  }
  0xc7   : > { %v446_v15 = vand.u32 2147483647, %v445_v13 }
  0xc9   : > { %v449_v18 = vmul.f32 %v448_v16, %v446_v15 }
  0xca   : > { %1274 = vperm.xlu1 %4918, %v1271_v3  }
  0xcb   : > { %v450_v35 = vxor.u32 2147483648, %v449_v18 }
  0xcd   : > { %v451_v37 = vsel %vm368_vm5, %v450_v35, %v449_v18  ;;  %vm659_vm5 = vcmp.eq.s32.totalorder %v5221_v28, 4294967295 }
  0xce   : > { %v454_v39 = vsel %vm367_vm6, %v5263_v36, %v451_v37  ;;  %vm660_vm6 = vcmp.eq.s32.totalorder %v5225_v29, 4294967295 }
  0xcf   : > { %4927 = vcosq.f32 %v454_v39 }
  0xd0   : > { %4929 = vsinq.f32 %v454_v39 }
  0xd1   : > { %4931 = vrcp.f32 %v1354_v0 }
  0xd2   : > { %4933 = vrcp.f32 %v2306_v4 }
  0xd3   : > { %4935 = vrcp.f32 %v3257_v7 }
  0xd9   : > { %v4928_v44 = vpop.eup %4927 }
  0xda   : > { %v4930_v48 = vpop.eup %4929  ;;  %v466_v45 = vxor.u32 2147483648, %v4928_v44 }
  0xdb   : > { %v463_v50 = vxor.u32 2147483648, %v4930_v48  ;;  %v4932_v6 = vpop.eup %4931 }
  0xdc   : > { %v467_v46 = vsel %vm465_vm7, %v466_v45, %v4930_v48  ;;  %vm741_vm7 = vcmp.eq.s32.totalorder %v5221_v28, 0  ;;  %1470 = vperm.xlu1 %4918, %v4932_v6   ;;  %v4934_v1 = vpop.eup %4933 }
  0xdd   : > { %v464_v51 = vsel %vm462_vm8, %v4928_v44, %v463_v50  ;;  %vm742_vm8 = vcmp.eq.s32.totalorder %v5225_v29, 0  ;;  %v4936_v8 = vpop.eup %4935 }
  0xde   : > { %v468_v41 = vsel %vm461_vm9, %v464_v51, %v467_v46  ;;  %vm4665_vm9 = vmpackc.low %vm660_vm6, %vm659_vm5  ;;  %vm823_vm6 = vcmp.eq.s32.totalorder %v5221_v28, 1 }
  0xdf   : > { %v469_v53 = vsel %vm458_vm11, nan, %v468_v41  ;;  %vm5316_vm11 = vmpackc.low %vm742_vm8, %vm741_vm7  ;;  %vm824_vm7 = vcmp.eq.s32.totalorder %v5225_v29, 1  ;;  %vm905_vm8 = vcmp.eq.s32.totalorder %v5221_v28, 2 }
  0xe0   : > { %v470_v54 = vmul.f32 %v469_v53, %v469_v53  ;;  %vm4680_vm5 = vmpackc.low %vm904_vm0, %vm903_vm15  ;;  %vm985_vm15 = vcmp.eq.s32.totalorder %v5201_v23, 3  ;;  %vm986_vm0 = vcmp.eq.s32.totalorder %v5205_v24, 3  ;;  %2105 = vperm.xlu1 %4918, %v5156_v5   ;;  %v3717_v5 = vld [vmem:[%s5967_s9 + $0x8] sm:$0xff] }
  0xe2   : > { %v476_v57 = vmul.f32 %v474_v56, %v470_v54 }
  0xe4   : > { %v477_v59 = vadd.f32 %v476_v57, %v5260_v34  ;;  %2227 = vperm.xlu1 %4918, %v4030_v9  }
  0xe6   : > { %4306 = vmatmul.mubr.msk.f32.vlgmr.msra.gmra.mrb[0].mxu0 %vm5973_vm1, %v477_v59  ;;  %4317 = vmatmul.mubr.msk.f32.vlgmr.msra.gmra.mrb[0].mxu1 %vm5973_vm1, %v477_v59 }
  0xe7   : > { %4663 = vmatpush3.bf16.msk.msra.mxu0 %vm4662_vm2, %v5027_v31  ;;  %4669 = vmatpush3.bf16.msk.msra.mxu1 %vm5300_vm3, %v5027_v31  ;;  %vm4674_vm2 = vmpackc.low %vm822_vm14, %vm821_vm13  ;;  %vm5987_vm14 = vmmov 0  }
  0xe8   : > { %4664 = vmatprep.subr.bf16.mxu0 %v5026_v27  ;;  %4670 = vmatprep.subr.bf16.mxu1 %v5026_v27 }
  0xe9   : > { %4327 = vmatprep.mubr.msk.f32.mxu0 %vm5969_vm12, %v5029_v33  ;;  %4338 = vmatprep.mubr.msk.f32.mxu1 %vm5969_vm12, %v5029_v33  ;;  %vm906_vm12 = vcmp.eq.s32.totalorder %v5225_v29, 2 }
  0xea   : > { %vm4683_vm13 = vmpackc.low %vm906_vm12, %vm905_vm8  ;;  %vm987_vm12 = vcmp.eq.s32.totalorder %v5221_v28, 3  ;;  %2422 = vperm.xlu1 %4918, %v4934_v1  }
  0xeb   : > { %4666 = vmatpush3.bf16.msk.msra.mxu0 %vm4665_vm9, %v5027_v31  ;;  %4672 = vmatpush3.bf16.msk.msra.mxu1 %vm5316_vm11, %v5027_v31  ;;  %vm4677_vm9 = vmpackc.low %vm824_vm7, %vm823_vm6  ;;  %vm5972_vm7 = vcmask 457728  }
  0xec   : > { %4673 = vmatprep.subr.bf16.mxu0 %v5026_v27  ;;  %4679 = vmatprep.subr.bf16.mxu1 %v5026_v27 }
  0xee   : > { %4328 = vmatmul.mubr.msk.f32.vlgmr.msra.gmra.mrb[2].mxu0 %vm5973_vm1, %v477_v59  ;;  %4339 = vmatmul.mubr.msk.f32.vlgmr.msra.gmra.mrb[2].mxu1 %vm5973_vm1, %v477_v59 }
  0xef   : > { %4675 = vmatpush3.bf16.msk.msra.mxu0 %vm4674_vm2, %v5027_v31  ;;  %4681 = vmatpush3.bf16.msk.msra.mxu1 %vm4680_vm5, %v5027_v31  ;;  %vm5353_vm2 = vmpackc.low %vm986_vm0, %vm985_vm15  ;;  %vm988_vm5 = vcmp.eq.s32.totalorder %v5225_v29, 3 }
  0xf0   : > { %4676 = vmatprep.subr.bf16.mxu0 %v5026_v27  ;;  %4682 = vmatprep.subr.bf16.mxu1 %v5026_v27  ;;  %vm5368_vm6 = vmpackc.low %vm988_vm5, %vm987_vm12 }
  0xf1   : > { %4349 = vmatprep.mubr.msk.f32.mxu0 %vm5987_vm14, %v5029_v33  ;;  %4360 = vmatprep.mubr.msk.f32.mxu1 %vm5987_vm14, %v5029_v33 }
  0xf2   : > { %3057 = vperm.xlu1 %4918, %v5168_v10  }
  0xf3   : > { %4678 = vmatpush3.bf16.msk.msra.mxu0 %vm4677_vm9, %v5027_v31  ;;  %4684 = vmatpush3.bf16.msk.msra.mxu1 %vm4683_vm13, %v5027_v31 }
  0xf4   : > { %4685 = vmatprep.subr.bf16.mxu0 %v5026_v27  ;;  %4691 = vmatprep.subr.bf16.mxu1 %v5026_v27 }
  0xf6   : > { %4350 = vmatmul.mubr.msk.f32.vlgmr.msra.gmra.mrb[4].mxu0 %vm5973_vm1, %v477_v59  ;;  %4361 = vmatmul.mubr.msk.f32.vlgmr.msra.gmra.mrb[4].mxu1 %vm5973_vm1, %v477_v59 }
  0xf7   : > { %4687 = vmatpush3.bf16.msk.msra.mxu0 %vm5353_vm2, %v5027_v31  ;;  %4371 = vmatprep.mubr.msk.f32.mxu0 %vm5987_vm14, %v5029_v33 }
  0xf8   : > { %4688 = vmatprep.subr.bf16.mxu0 %v5026_v27  ;;  %4388 = vmatprep.mubr.msk.f32.mxu1 %vm5987_vm14, %v5029_v33 }
  0xf9   : > { %3179 = vperm.xlu1 %4918, %v4086_v14  }
  0xfb   : > { %4690 = vmatpush3.bf16.msk.msra.mxu0 %vm5368_vm6, %v5027_v31 }
  0xfc   : > { %4391 = vmatprep.subr.mxu0 %v5029_v33 }
  0xfd   : > { %3373 = vperm.xlu1 %4918, %v4936_v8  }
  0xfe   : > { %4372 = vmatmul.mubr.msk.f32.vlgmr.msra.gmra.mrb[6].mxu0 %vm5973_vm1, %v477_v59 }
  0xff   : > { %4393 = vmatprep.mubr.msk.f32.mxu0 %vm5987_vm14, %v5029_v33 }
 0x101   : > { %3725 = vperm.xlu1 %4918, %v3717_v5  }
 0x141   : > { %v1072_v45 = vpop.permute.xlu1 %1071 }
 0x145   : > { %v1155_v41 = vpop.permute.xlu1 %1154 }
 0x1b9   : > { %v571_v11 = vpop.f32.mrb[0].mxu0  ;;  %v653_v17 = vpop.f32.mrb[0].mxu1 }
 0x1ba   : > { %v4692_v12 = vpack.c.bf16 %v653_v17, %v571_v11  ;;  %v4307_v13 = vpop.f32.mrb[1].mxu0  ;;  %v4318_v15 = vpop.f32.mrb[1].mxu1 }
 0x1bc   : > { %4693 = vmatpush3.bf16.msra.mxu1 %v4692_v12 }
 0x1bd   : > { %4694 = vmatprep.subr.bf16.mxu1 %v5026_v27 }
 0x1c1   : > { %v735_v10 = vpop.f32.mrb[2].mxu0  ;;  %v817_v16 = vpop.f32.mrb[2].mxu1 }
 0x1c2   : > { %v4695_v18 = vpack.c.bf16 %v817_v16, %v735_v10  ;;  %v4329_v19 = vpop.f32.mrb[3].mxu0  ;;  %v4340_v35 = vpop.f32.mrb[3].mxu1 }
 0x1c4   : > { %4696 = vmatpush3.bf16.msra.mxu1 %v4695_v18 }
 0x1c5   : > { %4697 = vmatprep.subr.bf16.mxu1 %v5026_v27 }
 0x1c9   : > { %v899_v37 = vpop.f32.mrb[4].mxu0  ;;  %v981_v38 = vpop.f32.mrb[4].mxu1 }
 0x1ca   : > { %v4698_v39 = vpack.c.bf16 %v981_v38, %v899_v37  ;;  %v4351_v40 = vpop.f32.mrb[5].mxu0  ;;  %v4362_v42 = vpop.f32.mrb[5].mxu1 }
 0x1cc   : > { %4699 = vmatpush3.bf16.msra.mxu1 %v4698_v39 }
 0x1cd   : > { %4386 = vmatprep.subr.mxu1 %v5029_v33 }
 0x1d1   : > { %v1063_v44 = vpop.f32.mrb[6].mxu0 }
 0x1d2   : > { %v4373_v48 = vpop.f32.mrb[7].mxu0  ;;  %4387 = vmatpush3.msra.mxu1 %v1063_v44 }
 0x1d3   : > { %4389 = vmatmul.mubr.msk.f32.vlgmr.msra.gmra.mrb[6].mxu1 %vm5972_vm7, %v1067_v43  ;;  %4706 = vmatprep.subr.bf16.mxu1 %v5026_v27  ;;  %vm1478_vm7 = vcmp.eq.s32.totalorder %v5225_v29, 4294967287 }
 0x1d4   : > { %4415 = vmatprep.mubr.msk.f32.mxu1 %vm5987_vm14, %v5029_v33 }
 0x2a6   : > { %v1144_v50 = vpop.f32.mrb[6].mxu1 }
 0x2a7   : > { %v5412_v46 = vadd.f32 %v1144_v50, %v1072_v45  ;;  %v4390_v51 = vpop.f32.mrb[7].mxu1 }
 0x2a9   : > { %v5415_v53 = vmul.f32 %v1155_v41, %v5412_v46 }
 0x2ab   : > { %v1161_v54 = vand.u32 2139095040, %v5415_v53  ;;  %v1158_v0 = vand.u32 2147483647, %v5415_v53 }
 0x2ad   : > { %v1162_v56 = vshrl.u32 %v1161_v54, 23  ;;  %v1165_v4 = vand.u32 8388607, %v1158_v0 }
 0x2af   : > { %v3962_v57 = vadd.s32 4294967169, %v1162_v56  ;;  %v1166_v10 = vor.u32 8388608, %v1165_v4 }
 0x2b1   : > { %v1168_v59 = vadd.s32 1, %v3962_v57  ;;  %v1206_v50 = vshll.u32 %v1166_v10, 8 }
 0x2b3   : > { %vm1169_vm8 = vcmp.gt.s32.totalorder %v1168_v59, 0 }
 0x2b4   : > { %v1170_v2 = vsel %vm1169_vm8, %v1168_v59, 0  ;;  %vm1160_vm8 = vcmp.lt.s32.totalorder %v5415_v53, 0 }
 0x2b5   : > { %v1172_v3 = vand.u32 31, %v1170_v2  ;;  %v1171_v9 = vshrl.u32 %v1170_v2, 5 }
 0x2b7   : > { %v1173_v6 = vsub.s32 32, %v1172_v3  ;;  %v1175_v7 = vshll.u32 %v5030_v47, %v1172_v3  ;;  %v1178_v1 = vshll.u32 %v5031_v49, %v1172_v3  ;;  %v1181_v5 = vshll.u32 %v5032_v52, %v1172_v3 }
 0x2b8   : > { %v1184_v17 = vshll.u32 %v5033_v55, %v1172_v3  ;;  %v1187_v13 = vshll.u32 %v5034_v58, %v1172_v3  ;;  %vm1190_vm9 = vcmp.lt.s32.totalorder %v1171_v9, 1  ;;  %vm1193_vm13 = vcmp.lt.s32.totalorder %v1171_v9, 4 }
 0x2b9   : > { %v1176_v14 = vshrl.u32 %v5031_v49, %v1173_v6  ;;  %v1179_v8 = vshrl.u32 %v5032_v52, %v1173_v6  ;;  %v1182_v11 = vshrl.u32 %v5033_v55, %v1173_v6  ;;  %v1185_v12 = vshrl.u32 %v5034_v58, %v1173_v6 }
 0x2ba   : > { %v1188_v15 = vshrl.u32 %v5035_v61, %v1173_v6  ;;  %v1174_v42 = vshrl.u32 %v5030_v47, %v1173_v6  ;;  %vm1192_vm15 = vcmp.lt.s32.totalorder %v1171_v9, 3  ;;  %vm1191_vm0 = vcmp.lt.s32.totalorder %v1171_v9, 2 }
 0x2bb   : > { %v1177_v16 = vor.u32 %v1176_v14, %v1175_v7  ;;  %v1180_v18 = vor.u32 %v1179_v8, %v1178_v1  ;;  %v1183_v19 = vor.u32 %v1182_v11, %v1181_v5  ;;  %v1186_v35 = vor.u32 %v1185_v12, %v1184_v17 }
 0x2bc   : > { %v1189_v37 = vor.u32 %v1188_v15, %v1187_v13 }
 0x2bd   : > { %v1195_v38 = vsel %vm1193_vm13, %v1183_v19, 2102212464  ;;  %v1198_v39 = vsel %vm1190_vm9, %v1177_v16, %v1180_v18  ;;  %v1202_v40 = vsel %vm1190_vm9, %v1180_v18, %v1183_v19  ;;  %v1199_v43 = vsel %vm1193_vm13, %v1186_v35, 920167782 }
 0x2be   : > { %v1203_v44 = vsel %vm1193_vm13, %v1189_v37, 1326507024  ;;  %v1200_v48 = vsel %vm1192_vm15, %v1183_v19, %v1199_v43  ;;  %v1194_v51 = vsel %vm1190_vm9, %v1174_v42, %v1177_v16  ;;  %v1196_v41 = vsel %vm1192_vm15, %v1180_v18, %v1195_v38 }
 0x2bf   : > { %v1204_v45 = vsel %vm1192_vm15, %v1186_v35, %v1203_v44  ;;  %v1201_v54 = vsel %vm1191_vm0, %v1198_v39, %v1200_v48  ;;  %v1197_v4 = vsel %vm1191_vm0, %v1194_v51, %v1196_v41  ;;  %vm1159_vm9 = vcmp.le.f32.partialorder %v1158_v0, 0.7853982 }
 0x2c0   : > { %v1205_v56 = vsel %vm1191_vm0, %v1202_v40, %v1204_v45  ;;  %v5435_v2 = vmul.u32.u64.low %v1206_v50, %v1201_v54  ;;  %v5436_v3 = vmul.u32.u64.high %v1206_v50, %v1201_v54, %v5435_v2  ;;  %v1213_v7 = vmul.u32 %v1206_v50, %v1197_v4 }
 0x2c1   : > { %v5432_v57 = vmul.u32.u64.low %v1206_v50, %v1205_v56  ;;  %v5433_v59 = vmul.u32.u64.high %v1206_v50, %v1205_v56, %v5432_v57 }
 0x2c2   : > { %v1216_v6 = vadd.s32 1, %v5436_v3 }
 0x2c3   : > { %vm1215_vm12 = vc.u32 %v5433_v59, %v5435_v2  ;;  %v1214_v16 = vadd.s32 %v5435_v2, %v5433_v59 }
 0x2c4   : > { %v1217_v9 = vsel %vm1215_vm12, %v1216_v6, %v5436_v3  ;;  %vm1250_vm12 = vweird.f32 %v5415_v53 }
 0x2c5   : > { %v1218_v1 = vadd.s32 %v1217_v9, %v1213_v7 }
 0x2c7   : > { %v1219_v14 = vadd.s32 536870912, %v1218_v1 }
 0x2c9   : > { %v1220_v8 = vshrl.u32 %v1219_v14, 30 }
 0x2cb   : > { %v1221_v5 = vshll.u32 %v1220_v8, 30  ;;  %v1244_v45 = vsub.s32 4, %v1220_v8 }
 0x2cd   : > { %v1222_v11 = vsub.s32 %v1218_v1, %v1221_v5  ;;  %v1245_v41 = vsel %vm1160_vm8, %v1244_v45, %v1220_v8  ;;  %v1266_v8 = vpop.permute.xlu0 %1265 }
 0x2ce   : > { %v1247_v56 = vsel %vm1159_vm9, 0, %v1245_v41 }
 0x2cf   : > { %v1224_v17 = vsub.s32 0, %v1222_v11  ;;  %v1251_v57 = vadd.s32 3, %v1247_v56 }
 0x2d1   : > { %v3963_v12 = vmin.u32 %v1224_v17, %v1222_v11  ;;  %v1252_v59 = vand.u32 3, %v1251_v57  ;;  %v1270_v17 = vld [vmem:[%s5963_s5] sm:$0xff] }
 0x2d3   : > { %v1226_v13 = vclz %v3963_v12  ;;  %vm1257_vm13 = vcmp.eq.s32.totalorder %v1252_v59, 2  ;;  %vm1254_vm15 = vcmp.eq.s32.totalorder %v1252_v59, 0  ;;  %vm1253_vm0 = vcmp.lt.s32.totalorder %v1252_v59, 2  ;;  %v1275_v12 = vpop.permute.xlu1 %1274 }
 0x2d5   : > { %v3964_v15 = vadd.s32 4294967294, %v1226_v13 }
 0x2d7   : > { %vm3965_vm5 = vcmp.lt.s32.totalorder %v3964_v15, 0 }
 0x2d8   : > { %v1229_v10 = vsel %vm3965_vm5, 0, %v3964_v15  ;;  %vm5971_vm5 = vcmask 64512  }
 0x2d9   : > { %v1230_v18 = vsub.s32 32, %v1229_v10  ;;  %v1234_v19 = vsub.s32 4294967266, %v1229_v10  ;;  %v1231_v35 = vshll.u32 %v1222_v11, %v1229_v10 }
 0x2db   : > { %v1232_v37 = vshrl.u32 %v1214_v16, %v1230_v18  ;;  %v1235_v38 = vadd.s32 127, %v1234_v19  ;;  %v1360_v18 = vpop.permute.xlu0 %1359 }
 0x2dd   : > { %v1233_v39 = vor.u32 %v1232_v37, %v1231_v35  ;;  %v1236_v40 = vshll.u32 %v1235_v38, 23 }
 0x2df   : > { %v1237_v42 = vor.u32 4788187, %v1236_v40  ;;  %v1240_v44 = vcvt.s32.f32 %v1233_v39 }
 0x2e1   : > { %v1238_v43 = vand.u32 2147483647, %v1237_v42 }
 0x2e3   : > { %v1241_v48 = vmul.f32 %v1240_v44, %v1238_v43 }
 0x2e5   : > { %v1242_v50 = vxor.u32 2147483648, %v1241_v48 }
 0x2e7   : > { %v1243_v51 = vsel %vm1160_vm8, %v1242_v50, %v1241_v48  ;;  %vm1475_vm8 = vcmp.eq.s32.totalorder %v5201_v23, 4294967287 }
 0x2e8   : > { %v1246_v54 = vsel %vm1159_vm9, %v5415_v53, %v1243_v51  ;;  %vm1476_vm9 = vcmp.eq.s32.totalorder %v5205_v24, 4294967287 }
 0x2e9   : > { %4937 = vcosq.f32 %v1246_v54 }
 0x2ea   : > { %4939 = vsinq.f32 %v1246_v54 }
 0x2f3   : > { %v4938_v2 = vpop.eup %4937 }
 0x2f4   : > { %v4940_v3 = vpop.eup %4939  ;;  %v1258_v4 = vxor.u32 2147483648, %v4938_v2 }
 0x2f5   : > { %v1255_v6 = vxor.u32 2147483648, %v4940_v3 }
 0x2f6   : > { %v1259_v7 = vsel %vm1257_vm13, %v1258_v4, %v4940_v3  ;;  %vm1560_vm13 = vcmp.eq.s32.totalorder %v5201_v23, 4294967290 }
 0x2f7   : > { %v1256_v9 = vsel %vm1254_vm15, %v4938_v2, %v1255_v6  ;;  %vm1561_vm15 = vcmp.eq.s32.totalorder %v5205_v24, 4294967290 }
 0x2f8   : > { %v1260_v0 = vsel %vm1253_vm0, %v1256_v9, %v1259_v7  ;;  %vm5459_vm0 = vmpackc.low %vm1476_vm9, %vm1475_vm8  ;;  %vm1562_vm8 = vcmp.eq.s32.totalorder %v5221_v28, 4294967290  ;;  %vm1563_vm9 = vcmp.eq.s32.totalorder %v5225_v29, 4294967290 }
 0x2f9   : > { %v1261_v1 = vsel %vm1250_vm12, nan, %v1260_v0  ;;  %vm4707_vm12 = vmpackc.low %vm1561_vm15, %vm1560_vm13 }
 0x2fa   : > { %v1262_v14 = vmul.f32 %v1261_v1, %v1261_v1  ;;  %4708 = vmatpush3.bf16.msk.msra.mxu1 %vm4707_vm12, %v5027_v31  ;;  %vm4710_vm13 = vmpackc.low %vm1563_vm9, %vm1562_vm8 }
 0x2fb   : > { %4709 = vmatprep.subr.bf16.mxu1 %v5026_v27 }
 0x2fc   : > { %v1268_v5 = vmul.f32 %v1266_v8, %v1262_v14 }
 0x2fe   : > { %v1269_v11 = vadd.f32 %v1268_v5, %v5412_v46  ;;  %4711 = vmatpush3.bf16.msk.msra.mxu1 %vm4710_vm13, %v5027_v31 }
 0x2ff   : > { %4718 = vmatprep.subr.bf16.mxu1 %v5026_v27 }
 0x300   : > { %4392 = vmatpush3.msra.mxu0 %v1269_v11 }
 0x301   : > { %4394 = vmatmul.mubr.msk.f32.vlgmr.msra.gmra.mrb[8].mxu0 %vm5971_vm5, %v1270_v17  ;;  %4700 = vmatprep.subr.bf16.mxu0 %v5026_v27  ;;  %vm1477_vm5 = vcmp.eq.s32.totalorder %v5221_v28, 4294967287 }
 0x302   : > { %4404 = vmatprep.mubr.msk.f32.mxu0 %vm5987_vm14, %v5029_v33  ;;  %4702 = vmatpush3.bf16.msk.msra.mxu0 %vm5459_vm0, %v5027_v31  ;;  %vm5473_vm1 = vmpackc.low %vm1478_vm7, %vm1477_vm5 }
 0x303   : > { %4703 = vmatprep.subr.bf16.mxu0 %v5026_v27 }
 0x306   : > { %4705 = vmatpush3.bf16.msk.msra.mxu0 %vm5473_vm1, %v5027_v31 }
 0x307   : > { %4712 = vmatprep.subr.bf16.mxu0 %v5026_v27 }
 0x3d4   : > { %v1347_v13 = vpop.f32.mrb[8].mxu0 }
 0x3d5   : > { %v1348_v15 = vadd.f32 %v1347_v13, %v1275_v12  ;;  %v4395_v10 = vpop.f32.mrb[9].mxu0 }
 0x3d7   : > { %v5484_v16 = vadd.f32 %v1348_v15, %v5260_v34 }
 0x3d9   : > { %v5487_v19 = vmul.f32 %v1360_v18, %v5484_v16 }
 0x3db   : > { %v1366_v35 = vand.u32 2139095040, %v5487_v19  ;;  %v1363_v40 = vand.u32 2147483647, %v5487_v19 }
 0x3dd   : > { %v1367_v37 = vshrl.u32 %v1366_v35, 23  ;;  %v1370_v44 = vand.u32 8388607, %v1363_v40 }
 0x3df   : > { %v3968_v38 = vadd.s32 4294967169, %v1367_v37  ;;  %v1371_v4 = vor.u32 8388608, %v1370_v44 }
 0x3e1   : > { %v1373_v39 = vadd.s32 1, %v3968_v38  ;;  %v1411_v10 = vshll.u32 %v1371_v4, 8 }
 0x3e3   : > { %vm1374_vm7 = vcmp.gt.s32.totalorder %v1373_v39, 0 }
 0x3e4   : > { %v1375_v42 = vsel %vm1374_vm7, %v1373_v39, 0  ;;  %vm1365_vm7 = vcmp.lt.s32.totalorder %v5487_v19, 0 }
 0x3e5   : > { %v1377_v43 = vand.u32 31, %v1375_v42  ;;  %v1376_v34 = vshrl.u32 %v1375_v42, 5 }
 0x3e7   : > { %v1378_v48 = vsub.s32 32, %v1377_v43  ;;  %v1380_v45 = vshll.u32 %v5030_v47, %v1377_v43  ;;  %v1383_v50 = vshll.u32 %v5031_v49, %v1377_v43  ;;  %v1386_v54 = vshll.u32 %v5032_v52, %v1377_v43 }
 0x3e8   : > { %v1389_v57 = vshll.u32 %v5033_v55, %v1377_v43  ;;  %v1392_v2 = vshll.u32 %v5034_v58, %v1377_v43  ;;  %vm1395_vm5 = vcmp.lt.s32.totalorder %v1376_v34, 1  ;;  %vm1398_vm15 = vcmp.lt.s32.totalorder %v1376_v34, 4 }
 0x3e9   : > { %v1381_v51 = vshrl.u32 %v5031_v49, %v1378_v48  ;;  %v1384_v41 = vshrl.u32 %v5032_v52, %v1378_v48  ;;  %v1387_v56 = vshrl.u32 %v5033_v55, %v1378_v48  ;;  %v1390_v59 = vshrl.u32 %v5034_v58, %v1378_v48 }
 0x3ea   : > { %v1393_v3 = vshrl.u32 %v5035_v61, %v1378_v48  ;;  %v1379_v11 = vshrl.u32 %v5030_v47, %v1378_v48  ;;  %vm1397_vm12 = vcmp.lt.s32.totalorder %v1376_v34, 3  ;;  %vm1396_vm8 = vcmp.lt.s32.totalorder %v1376_v34, 2 }
 0x3eb   : > { %v1382_v6 = vor.u32 %v1381_v51, %v1380_v45  ;;  %v1385_v7 = vor.u32 %v1384_v41, %v1383_v50  ;;  %v1388_v9 = vor.u32 %v1387_v56, %v1386_v54  ;;  %v1391_v0 = vor.u32 %v1390_v59, %v1389_v57 }
 0x3ec   : > { %v1394_v1 = vor.u32 %v1393_v3, %v1392_v2 }
 0x3ed   : > { %v1400_v14 = vsel %vm1398_vm15, %v1388_v9, 2102212464  ;;  %v1403_v8 = vsel %vm1395_vm5, %v1382_v6, %v1385_v7  ;;  %v1407_v5 = vsel %vm1395_vm5, %v1385_v7, %v1388_v9  ;;  %v1404_v17 = vsel %vm1398_vm15, %v1391_v0, 920167782 }
 0x3ee   : > { %v1408_v12 = vsel %vm1398_vm15, %v1394_v1, 1326507024  ;;  %v1405_v13 = vsel %vm1397_vm12, %v1388_v9, %v1404_v17  ;;  %v1399_v18 = vsel %vm1395_vm5, %v1379_v11, %v1382_v6  ;;  %v1401_v35 = vsel %vm1397_vm12, %v1385_v7, %v1400_v14 }
 0x3ef   : > { %v1409_v15 = vsel %vm1397_vm12, %v1391_v0, %v1408_v12  ;;  %v1406_v37 = vsel %vm1396_vm8, %v1403_v8, %v1405_v13  ;;  %v1402_v45 = vsel %vm1396_vm8, %v1399_v18, %v1401_v35  ;;  %vm1364_vm5 = vcmp.le.f32.partialorder %v1363_v40, 0.7853982 }
 0x3f0   : > { %v1410_v38 = vsel %vm1396_vm8, %v1407_v5, %v1409_v15  ;;  %v5507_v43 = vmul.u32.u64.low %v1411_v10, %v1406_v37  ;;  %v5508_v44 = vmul.u32.u64.high %v1411_v10, %v1406_v37, %v5507_v43  ;;  %v1418_v50 = vmul.u32 %v1411_v10, %v1402_v45 }
 0x3f1   : > { %v5504_v39 = vmul.u32.u64.low %v1411_v10, %v1410_v38  ;;  %v5505_v42 = vmul.u32.u64.high %v1411_v10, %v1410_v38, %v5504_v39 }
 0x3f2   : > { %v1421_v48 = vadd.s32 1, %v5508_v44 }
 0x3f3   : > { %vm1420_vm9 = vc.u32 %v5505_v42, %v5507_v43  ;;  %v1419_v7 = vadd.s32 %v5507_v43, %v5505_v42 }
 0x3f4   : > { %v1422_v34 = vsel %vm1420_vm9, %v1421_v48, %v5508_v44  ;;  %vm1455_vm9 = vweird.f32 %v5487_v19 }
 0x3f5   : > { %v1423_v51 = vadd.s32 %v1422_v34, %v1418_v50 }
 0x3f7   : > { %v1424_v41 = vadd.s32 536870912, %v1423_v51 }
 0x3f9   : > { %v1425_v54 = vshrl.u32 %v1424_v41, 30 }
 0x3fb   : > { %v1426_v56 = vshll.u32 %v1425_v54, 30  ;;  %v1449_v10 = vsub.s32 4, %v1425_v54 }
 0x3fd   : > { %v1427_v57 = vsub.s32 %v1423_v51, %v1426_v56  ;;  %v1450_v37 = vsel %vm1365_vm7, %v1449_v10, %v1425_v54  ;;  %v1471_v56 = vpop.permute.xlu1 %1470 }
 0x3fe   : > { %v1452_v39 = vsel %vm1364_vm5, 0, %v1450_v37 }
 0x3ff   : > { %v1429_v59 = vsub.s32 0, %v1427_v57  ;;  %v1456_v42 = vadd.s32 3, %v1452_v39 }
 0x401   : > { %v3969_v2 = vmin.u32 %v1429_v59, %v1427_v57  ;;  %v1457_v43 = vand.u32 3, %v1456_v42  ;;  %v2106_v39 = vpop.permute.xlu1 %2105 }
 0x403   : > { %v1431_v3 = vclz %v3969_v2  ;;  %vm1462_vm15 = vcmp.eq.s32.totalorder %v1457_v43, 2  ;;  %vm1459_vm12 = vcmp.eq.s32.totalorder %v1457_v43, 0  ;;  %vm1458_vm8 = vcmp.lt.s32.totalorder %v1457_v43, 2 }
 0x405   : > { %v3970_v4 = vadd.s32 4294967294, %v1431_v3 }
 0x407   : > { %vm3971_vm13 = vcmp.lt.s32.totalorder %v3970_v4, 0 }
 0x408   : > { %v1434_v6 = vsel %vm3971_vm13, 0, %v3970_v4  ;;  %vm5996_vm13 = vcmask 261120  }
 0x409   : > { %v1435_v9 = vsub.s32 32, %v1434_v6  ;;  %v1439_v0 = vsub.s32 4294967266, %v1434_v6  ;;  %v1436_v1 = vshll.u32 %v1427_v57, %v1434_v6 }
 0x40b   : > { %v1437_v14 = vshrl.u32 %v1419_v7, %v1435_v9  ;;  %v1440_v8 = vadd.s32 127, %v1439_v0 }
 0x40d   : > { %v1438_v5 = vor.u32 %v1437_v14, %v1436_v1  ;;  %v1441_v11 = vshll.u32 %v1440_v8, 23 }
 0x40f   : > { %v1442_v17 = vor.u32 4788187, %v1441_v11  ;;  %v1445_v13 = vcvt.s32.f32 %v1438_v5 }
 0x411   : > { %v1443_v12 = vand.u32 2147483647, %v1442_v17 }
 0x413   : > { %v1446_v15 = vmul.f32 %v1445_v13, %v1443_v12  ;;  %v4021_v13 = vld [vmem:[%s5960_s2 + $0x8] sm:$0xff] }
 0x415   : > { %v1447_v18 = vxor.u32 2147483648, %v1446_v15 }
 0x417   : > { %v1448_v35 = vsel %vm1365_vm7, %v1447_v18, %v1446_v15  ;;  %vm5997_vm7 = vmmov %vm5996_vm13  ;;  %v2023_v18 = vpop.permute.xlu0 %2022 }
 0x418   : > { %v1451_v38 = vsel %vm1364_vm5, %v5487_v19, %v1448_v35  ;;  %vm1852_vm5 = vcmp.eq.s32.totalorder %v5201_v23, 6 }
 0x419   : > { %4941 = vcosq.f32 %v1451_v38 }
 0x41a   : > { %4943 = vsinq.f32 %v1451_v38 }
 0x423   : > { %v4942_v44 = vpop.eup %4941 }
 0x424   : > { %v4944_v45 = vpop.eup %4943  ;;  %v1463_v48 = vxor.u32 2147483648, %v4942_v44 }
 0x425   : > { %v1460_v50 = vxor.u32 2147483648, %v4944_v45 }
 0x426   : > { %v1464_v34 = vsel %vm1462_vm15, %v1463_v48, %v4944_v45  ;;  %vm1853_vm15 = vcmp.eq.s32.totalorder %v5205_v24, 6 }
 0x427   : > { %v1461_v51 = vsel %vm1459_vm12, %v4942_v44, %v1460_v50  ;;  %vm1854_vm12 = vcmp.eq.s32.totalorder %v5221_v28, 6 }
 0x428   : > { %v1465_v40 = vsel %vm1458_vm8, %v1461_v51, %v1464_v34  ;;  %vm1855_vm8 = vcmp.eq.s32.totalorder %v5225_v29, 6 }
 0x429   : > { %v1466_v41 = vsel %vm1455_vm9, nan, %v1465_v40  ;;  %vm5998_vm9 = vmmov %vm5997_vm7 }
 0x42a   : > { %v1467_v54 = vmul.f32 %v1466_v41, %v1466_v41 }
 0x42c   : > { %v1473_v57 = vmul.f32 %v1471_v56, %v1467_v54 }
 0x42e   : > { %v1474_v59 = vadd.f32 %v1473_v57, %v5484_v16 }
 0x430   : > { %4405 = vmatmul.mubr.msk.f32.vlgmr.msra.gmra.mrb[10].mxu0 %vm5996_vm13, %v1474_v59  ;;  %4416 = vmatmul.mubr.msk.f32.vlgmr.msra.gmra.mrb[8].mxu1 %vm5997_vm7, %v1474_v59  ;;  %vm5999_vm13 = vmmov %vm5997_vm7  ;;  %vm1935_vm7 = vcmp.eq.s32.totalorder %v5205_v24, 9 }
 0x431   : > { %4714 = vmatpush3.bf16.msk.msra.mxu0 %vm5227_vm4, %v5027_v31  ;;  %4720 = vmatpush3.bf16.msk.msra.mxu1 %vm5300_vm3, %v5027_v31  ;;  %vm4731_vm4 = vmpackc.low %vm1853_vm15, %vm1852_vm5  ;;  %vm1936_vm15 = vcmp.eq.s32.totalorder %v5221_v28, 9 }
 0x432   : > { %4715 = vmatprep.subr.bf16.mxu0 %v5026_v27  ;;  %4721 = vmatprep.subr.bf16.mxu1 %v5026_v27 }
 0x433   : > { %4426 = vmatprep.mubr.msk.f32.mxu0 %vm5987_vm14, %v5029_v33  ;;  %4437 = vmatprep.mubr.msk.f32.mxu1 %vm5987_vm14, %v5029_v33 }
 0x435   : > { %4717 = vmatpush3.bf16.msk.msra.mxu0 %vm5241_vm10, %v5027_v31  ;;  %4723 = vmatpush3.bf16.msk.msra.mxu1 %vm5316_vm11, %v5027_v31  ;;  %vm4734_vm10 = vmpackc.low %vm1855_vm8, %vm1854_vm12 }
 0x436   : > { %4724 = vmatprep.subr.bf16.mxu0 %v5026_v27  ;;  %4730 = vmatprep.subr.bf16.mxu1 %v5026_v27 }
 0x438   : > { %4427 = vmatmul.mubr.msk.f32.vlgmr.msra.gmra.mrb[12].mxu0 %vm5998_vm9, %v1474_v59  ;;  %4438 = vmatmul.mubr.msk.f32.vlgmr.msra.gmra.mrb[10].mxu1 %vm5999_vm13, %v1474_v59  ;;  %vm6007_vm13 = vcmask 457728  }
 0x439   : > { %4726 = vmatpush3.bf16.msk.msra.mxu0 %vm5353_vm2, %v5027_v31  ;;  %4732 = vmatpush3.bf16.msk.msra.mxu1 %vm4731_vm4, %v5027_v31  ;;  %vm5974_vm2 = vmmov 1   ;;  %vm6002_vm4 = vmmov %vm5998_vm9 }
 0x43a   : > { %4727 = vmatprep.subr.bf16.mxu0 %v5026_v27  ;;  %4733 = vmatprep.subr.bf16.mxu1 %v5026_v27  ;;  %vm5568_vm5 = vmpackc.low %vm1935_vm7, %vm5974_vm2  ;;  %vm2514_vm2 = vcmp.eq.s32.totalorder %v5221_v28, 4294967278 }
 0x43b   : > { %4448 = vmatprep.mubr.msk.f32.mxu0 %vm5987_vm14, %v5029_v33  ;;  %4459 = vmatprep.mubr.msk.f32.mxu1 %vm5987_vm14, %v5029_v33  ;;  %v6001_v62 = vsel %vm5568_vm5, 4294967295, %v6000_v62  ;;  %vm6003_vm12 = vmmov %vm6002_vm4 }
 0x43c   : > { %vm6006_vm9 = vmmov %vm6002_vm4 }
 0x43d   : > { %4729 = vmatpush3.bf16.msk.msra.mxu0 %vm5368_vm6, %v5027_v31  ;;  %4735 = vmatpush3.bf16.msk.msra.mxu1 %vm4734_vm10, %v5027_v31  ;;  %vm1937_vm6 = vcmp.eq.s32.totalorder %v5225_v29, 9 }
 0x43e   : > { %4736 = vmatprep.subr.bf16.mxu0 %v5026_v27  ;;  %4743 = vmatprep.subr.bf16.mxu1 %v5026_v27  ;;  %vm5583_vm8 = vmpackc.low %vm1937_vm6, %vm1936_vm15 }
 0x43f   : > { %v6005_v63 = vsel %vm5583_vm8, 4294967295, %v6004_v63 }
 0x440   : > { %4449 = vmatmul.mubr.msk.f32.vlgmr.msra.gmra.mrb[14].mxu0 %vm6002_vm4, %v1474_v59  ;;  %4460 = vmatmul.mubr.msk.f32.vlgmr.msra.gmra.mrb[12].mxu1 %vm6003_vm12, %v1474_v59 }
 0x441   : > { %4739 = vmatpush3.bf16.msk.msra.mxu0 %vm5568_vm5, %v5564_v32  ;;  %4470 = vmatprep.mubr.msk.f32.mxu0 %vm5987_vm14, %v5029_v33 }
 0x442   : > { %4740 = vmatprep.subr.bf16.mxu0 %v5026_v27  ;;  %4487 = vmatprep.mubr.msk.f32.mxu1 %vm5987_vm14, %v5029_v33 }
 0x445   : > { %4742 = vmatpush3.bf16.msk.msra.mxu0 %vm5583_vm8, %v5027_v31  ;;  %vm2515_vm8 = vcmp.eq.s32.totalorder %v5225_v29, 4294967278 }
 0x446   : > { %4490 = vmatprep.subr.mxu0 %v5029_v33 }
 0x448   : > { %4471 = vmatmul.mubr.msk.f32.vlgmr.msra.gmra.mrb[16].mxu0 %vm6006_vm9, %v1474_v59 }
 0x449   : > { %4492 = vmatprep.mubr.msk.f32.mxu0 %vm5987_vm14, %v5029_v33 }
 0x503   : > { %v1556_v19 = vpop.f32.mrb[10].mxu0  ;;  %v1638_v2 = vpop.f32.mrb[8].mxu1 }
 0x504   : > { %v4744_v3 = vpack.c.bf16 %v1638_v2, %v1556_v19  ;;  %v4406_v4 = vpop.f32.mrb[11].mxu0  ;;  %v4417_v6 = vpop.f32.mrb[9].mxu1 }
 0x506   : > { %4745 = vmatpush3.bf16.msra.mxu1 %v4744_v3 }
 0x507   : > { %4746 = vmatprep.subr.bf16.mxu1 %v5026_v27 }
 0x50b   : > { %v1708_v7 = vpop.f32.mrb[12].mxu0  ;;  %v1778_v9 = vpop.f32.mrb[10].mxu1 }
 0x50c   : > { %v4747_v0 = vpack.c.bf16 %v1778_v9, %v1708_v7  ;;  %v4428_v1 = vpop.f32.mrb[13].mxu0  ;;  %v4439_v14 = vpop.f32.mrb[11].mxu1 }
 0x50e   : > { %4748 = vmatpush3.bf16.msra.mxu1 %v4747_v0 }
 0x50f   : > { %4749 = vmatprep.subr.bf16.mxu1 %v5026_v27 }
 0x513   : > { %v1848_v8 = vpop.f32.mrb[14].mxu0  ;;  %v1930_v5 = vpop.f32.mrb[12].mxu1 }
 0x514   : > { %v4750_v11 = vpack.c.bf16 %v1930_v5, %v1848_v8  ;;  %v4450_v17 = vpop.f32.mrb[15].mxu0  ;;  %v4461_v12 = vpop.f32.mrb[13].mxu1 }
 0x516   : > { %4751 = vmatpush3.bf16.msra.mxu1 %v4750_v11 }
 0x517   : > { %4485 = vmatprep.subr.mxu1 %v5029_v33 }
 0x51b   : > { %v2012_v15 = vpop.f32.mrb[16].mxu0 }
 0x51c   : > { %v4472_v10 = vpop.f32.mrb[17].mxu0  ;;  %4486 = vmatpush3.msra.mxu1 %v2012_v15 }
 0x51d   : > { %4488 = vmatmul.mubr.msk.f32.vlgmr.msra.gmra.mrb[14].mxu1 %vm6007_vm13, %v4021_v13  ;;  %4758 = vmatprep.subr.bf16.mxu1 %v5026_v27 }
 0x51e   : > { %4514 = vmatprep.mubr.msk.f32.mxu1 %vm5987_vm14, %v5029_v33 }
 0x5f0   : > { %v2094_v35 = vpop.f32.mrb[14].mxu1 }
 0x5f1   : > { %v5606_v37 = vadd.f32 %v2094_v35, %v2023_v18  ;;  %v4489_v38 = vpop.f32.mrb[15].mxu1 }
 0x5f3   : > { %v5609_v42 = vmul.f32 %v2106_v39, %v5606_v37 }
 0x5f5   : > { %v2112_v43 = vand.u32 2139095040, %v5609_v42  ;;  %v2109_v50 = vand.u32 2147483647, %v5609_v42  ;;  %vm2111_vm13 = vcmp.lt.s32.totalorder %v5609_v42, 0 }
 0x5f7   : > { %v2113_v44 = vshrl.u32 %v2112_v43, 23  ;;  %v2116_v40 = vand.u32 8388607, %v2109_v50 }
 0x5f9   : > { %v4025_v45 = vadd.s32 4294967169, %v2113_v44  ;;  %v2117_v9 = vor.u32 8388608, %v2116_v40 }
 0x5fb   : > { %v2119_v48 = vadd.s32 1, %v4025_v45  ;;  %v2157_v38 = vshll.u32 %v2117_v9, 8 }
 0x5fd   : > { %vm2120_vm10 = vcmp.gt.s32.totalorder %v2119_v48, 0 }
 0x5fe   : > { %v2121_v34 = vsel %vm2120_vm10, %v2119_v48, 0  ;;  %vm2110_vm10 = vcmp.le.f32.partialorder %v2109_v50, 0.7853982 }
 0x5ff   : > { %v2123_v51 = vand.u32 31, %v2121_v34  ;;  %v2122_v54 = vshrl.u32 %v2121_v34, 5 }
 0x601   : > { %v2124_v41 = vsub.s32 32, %v2123_v51  ;;  %v2126_v56 = vshll.u32 %v5030_v47, %v2123_v51  ;;  %v2129_v57 = vshll.u32 %v5031_v49, %v2123_v51  ;;  %v2132_v19 = vshll.u32 %v5032_v52, %v2123_v51 }
 0x602   : > { %v2135_v3 = vshll.u32 %v5033_v55, %v2123_v51  ;;  %v2138_v6 = vshll.u32 %v5034_v58, %v2123_v51  ;;  %vm2141_vm7 = vcmp.lt.s32.totalorder %v2122_v54, 1  ;;  %vm2144_vm15 = vcmp.lt.s32.totalorder %v2122_v54, 4 }
 0x603   : > { %v2127_v59 = vshrl.u32 %v5031_v49, %v2124_v41  ;;  %v2130_v30 = vshrl.u32 %v5032_v52, %v2124_v41  ;;  %v2133_v2 = vshrl.u32 %v5033_v55, %v2124_v41  ;;  %v2136_v4 = vshrl.u32 %v5034_v58, %v2124_v41 }
 0x604   : > { %v2139_v7 = vshrl.u32 %v5035_v61, %v2124_v41  ;;  %v2125_v13 = vshrl.u32 %v5030_v47, %v2124_v41  ;;  %vm2143_vm6 = vcmp.lt.s32.totalorder %v2122_v54, 3  ;;  %vm2142_vm4 = vcmp.lt.s32.totalorder %v2122_v54, 2 }
 0x605   : > { %v2128_v0 = vor.u32 %v2127_v59, %v2126_v56  ;;  %v2131_v1 = vor.u32 %v2130_v30, %v2129_v57  ;;  %v2134_v14 = vor.u32 %v2133_v2, %v2132_v19  ;;  %v2137_v8 = vor.u32 %v2136_v4, %v2135_v3 }
 0x606   : > { %v2140_v5 = vor.u32 %v2139_v7, %v2138_v6 }
 0x607   : > { %v2146_v11 = vsel %vm2144_vm15, %v2134_v14, 2102212464  ;;  %v2149_v17 = vsel %vm2141_vm7, %v2128_v0, %v2131_v1  ;;  %v2153_v12 = vsel %vm2141_vm7, %v2131_v1, %v2134_v14  ;;  %v2150_v15 = vsel %vm2144_vm15, %v2137_v8, 920167782 }
 0x608   : > { %v2154_v10 = vsel %vm2144_vm15, %v2140_v5, 1326507024  ;;  %v2151_v18 = vsel %vm2143_vm6, %v2134_v14, %v2150_v15  ;;  %v2145_v39 = vsel %vm2141_vm7, %v2125_v13, %v2128_v0  ;;  %v2147_v43 = vsel %vm2143_vm6, %v2131_v1, %v2146_v11 }
 0x609   : > { %v2155_v35 = vsel %vm2143_vm6, %v2137_v8, %v2154_v10  ;;  %v2152_v44 = vsel %vm2142_vm4, %v2149_v17, %v2151_v18  ;;  %v2148_v56 = vsel %vm2142_vm4, %v2145_v39, %v2147_v43 }
 0x60a   : > { %v2156_v45 = vsel %vm2142_vm4, %v2153_v12, %v2155_v35  ;;  %v5629_v51 = vmul.u32.u64.low %v2157_v38, %v2152_v44  ;;  %v5630_v40 = vmul.u32.u64.high %v2157_v38, %v2152_v44, %v5629_v51  ;;  %v2164_v57 = vmul.u32 %v2157_v38, %v2148_v56 }
 0x60b   : > { %v5626_v48 = vmul.u32.u64.low %v2157_v38, %v2156_v45  ;;  %v5627_v34 = vmul.u32.u64.high %v2157_v38, %v2156_v45, %v5626_v48  ;;  %vm2201_vm4 = vweird.f32 %v5609_v42 }
 0x60c   : > { %v2167_v41 = vadd.s32 1, %v5630_v40 }
 0x60d   : > { %vm2166_vm12 = vc.u32 %v5627_v34, %v5629_v51  ;;  %v2165_v1 = vadd.s32 %v5629_v51, %v5627_v34 }
 0x60e   : > { %v2168_v54 = vsel %vm2166_vm12, %v2167_v41, %v5630_v40  ;;  %vm6008_vm12 = vcmask 64512  }
 0x60f   : > { %v2169_v59 = vadd.s32 %v2168_v54, %v2164_v57 }
 0x611   : > { %v2170_v30 = vadd.s32 536870912, %v2169_v59 }
 0x613   : > { %v2171_v19 = vshrl.u32 %v2170_v30, 30 }
 0x615   : > { %v2172_v2 = vshll.u32 %v2171_v19, 30  ;;  %v2195_v38 = vsub.s32 4, %v2171_v19 }
 0x617   : > { %v2173_v3 = vsub.s32 %v2169_v59, %v2172_v2  ;;  %v2196_v44 = vsel %vm2111_vm13, %v2195_v38, %v2171_v19  ;;  %v2217_v2 = vpop.permute.xlu0 %2216 }
 0x618   : > { %v2198_v48 = vsel %vm2110_vm10, 0, %v2196_v44 }
 0x619   : > { %v2175_v4 = vsub.s32 0, %v2173_v3  ;;  %v2202_v34 = vadd.s32 3, %v2198_v48 }
 0x61b   : > { %v4026_v6 = vmin.u32 %v2175_v4, %v2173_v3  ;;  %v2203_v51 = vand.u32 3, %v2202_v34 }
 0x61d   : > { %v2177_v7 = vclz %v4026_v6  ;;  %vm2208_vm7 = vcmp.eq.s32.totalorder %v2203_v51, 2  ;;  %vm2205_vm15 = vcmp.eq.s32.totalorder %v2203_v51, 0  ;;  %vm2204_vm6 = vcmp.lt.s32.totalorder %v2203_v51, 2  ;;  %v4029_v6 = vld [vmem:[%s5963_s5 + $0x8] sm:$0xff] }
 0x61f   : > { %v4027_v9 = vadd.s32 4294967294, %v2177_v7 }
 0x621   : > { %vm4028_vm9 = vcmp.lt.s32.totalorder %v4027_v9, 0 }
 0x622   : > { %v2180_v0 = vsel %vm4028_vm9, 0, %v4027_v9  ;;  %vm2427_vm9 = vcmp.eq.s32.totalorder %v5201_v23, 4294967269  ;;  %v2312_v9 = vpop.permute.xlu0 %2311 }
 0x623   : > { %v2181_v14 = vsub.s32 32, %v2180_v0  ;;  %v2185_v8 = vsub.s32 4294967266, %v2180_v0  ;;  %v2182_v5 = vshll.u32 %v2173_v3, %v2180_v0 }
 0x625   : > { %v2183_v11 = vshrl.u32 %v2165_v1, %v2181_v14  ;;  %v2186_v17 = vadd.s32 127, %v2185_v8 }
 0x627   : > { %v2184_v12 = vor.u32 %v2183_v11, %v2182_v5  ;;  %v2187_v13 = vshll.u32 %v2186_v17, 23 }
 0x629   : > { %v2188_v15 = vor.u32 4788187, %v2187_v13  ;;  %v2191_v18 = vcvt.s32.f32 %v2184_v12 }
 0x62b   : > { %v2189_v10 = vand.u32 2147483647, %v2188_v15 }
 0x62d   : > { %v2192_v35 = vmul.f32 %v2191_v18, %v2189_v10 }
 0x62f   : > { %v2193_v39 = vxor.u32 2147483648, %v2192_v35 }
 0x631   : > { %v2194_v43 = vsel %vm2111_vm13, %v2193_v39, %v2192_v35  ;;  %vm2428_vm13 = vcmp.eq.s32.totalorder %v5205_v24, 4294967269 }
 0x632   : > { %v2197_v45 = vsel %vm2110_vm10, %v5609_v42, %v2194_v43  ;;  %vm2512_vm10 = vcmp.eq.s32.totalorder %v5201_v23, 4294967278  ;;  %v2228_v23 = vpop.permute.xlu1 %2227 }
 0x633   : > { %4945 = vcosq.f32 %v2197_v45 }
 0x634   : > { %4947 = vsinq.f32 %v2197_v45 }
 0x63d   : > { %v4946_v40 = vpop.eup %4945 }
 0x63e   : > { %v4948_v56 = vpop.eup %4947  ;;  %v2209_v41 = vxor.u32 2147483648, %v4946_v40 }
 0x63f   : > { %v2206_v57 = vxor.u32 2147483648, %v4948_v56 }
 0x640   : > { %v2210_v54 = vsel %vm2208_vm7, %v2209_v41, %v4948_v56  ;;  %vm2513_vm7 = vcmp.eq.s32.totalorder %v5205_v24, 4294967278 }
 0x641   : > { %v2207_v59 = vsel %vm2205_vm15, %v4946_v40, %v2206_v57  ;;  %vm4753_vm15 = vmpackc.low %vm2428_vm13, %vm2427_vm9 }
 0x642   : > { %v2211_v50 = vsel %vm2204_vm6, %v2207_v59, %v2210_v54  ;;  %vm4759_vm6 = vmpackc.low %vm2513_vm7, %vm2512_vm10 }
 0x643   : > { %v2212_v30 = vsel %vm2201_vm4, nan, %v2211_v50  ;;  %4760 = vmatpush3.bf16.msk.msra.mxu1 %vm4759_vm6, %v5027_v31  ;;  %vm2429_vm4 = vcmp.eq.s32.totalorder %v5221_v28, 4294967269  ;;  %vm4762_vm9 = vmpackc.low %vm2515_vm8, %vm2514_vm2 }
 0x644   : > { %v2213_v19 = vmul.f32 %v2212_v30, %v2212_v30  ;;  %4761 = vmatprep.subr.bf16.mxu1 %v5026_v27 }
 0x646   : > { %v2219_v3 = vmul.f32 %v2217_v2, %v2213_v19 }
 0x647   : > { %4763 = vmatpush3.bf16.msk.msra.mxu1 %vm4762_vm9, %v5027_v31 }
 0x648   : > { %v2220_v4 = vadd.f32 %v2219_v3, %v5606_v37  ;;  %4770 = vmatprep.subr.bf16.mxu1 %v5026_v27 }
 0x64a   : > { %4491 = vmatpush3.msra.mxu0 %v2220_v4 }
 0x64b   : > { %4493 = vmatmul.mubr.msk.f32.vlgmr.msra.gmra.mrb[18].mxu0 %vm6008_vm12, %v4029_v6  ;;  %4752 = vmatprep.subr.bf16.mxu0 %v5026_v27  ;;  %vm2430_vm12 = vcmp.eq.s32.totalorder %v5225_v29, 4294967269 }
 0x64c   : > { %4503 = vmatprep.mubr.msk.f32.mxu0 %vm5987_vm14, %v5029_v33  ;;  %4754 = vmatpush3.bf16.msk.msra.mxu0 %vm4753_vm15, %v5027_v31  ;;  %vm4756_vm5 = vmpackc.low %vm2430_vm12, %vm2429_vm4 }
 0x64d   : > { %4755 = vmatprep.subr.bf16.mxu0 %v5026_v27 }
 0x650   : > { %4757 = vmatpush3.bf16.msk.msra.mxu0 %vm4756_vm5, %v5027_v31 }
 0x651   : > { %4764 = vmatprep.subr.bf16.mxu0 %v5026_v27 }
 0x71e   : > { %v2299_v24 = vpop.f32.mrb[18].mxu0 }
 0x71f   : > { %v2300_v37 = vadd.f32 %v2299_v24, %v2228_v23  ;;  %v4494_v42 = vpop.f32.mrb[19].mxu0 }
 0x721   : > { %v5666_v7 = vadd.f32 %v2300_v37, %v5484_v16 }
 0x723   : > { %v5669_v0 = vmul.f32 %v2312_v9, %v5666_v7 }
 0x725   : > { %v2318_v1 = vand.u32 2139095040, %v5669_v0  ;;  %v2315_v11 = vand.u32 2147483647, %v5669_v0  ;;  %vm2317_vm6 = vcmp.lt.s32.totalorder %v5669_v0, 0 }
 0x727   : > { %v2319_v14 = vshrl.u32 %v2318_v1, 23  ;;  %v2322_v13 = vand.u32 8388607, %v2315_v11  ;;  %vm2316_vm4 = vcmp.le.f32.partialorder %v2315_v11, 0.7853982 }
 0x729   : > { %v4033_v8 = vadd.s32 4294967169, %v2319_v14  ;;  %v2323_v51 = vor.u32 8388608, %v2322_v13 }
 0x72b   : > { %v2325_v5 = vadd.s32 1, %v4033_v8  ;;  %v2363_v23 = vshll.u32 %v2323_v51, 8 }
 0x72d   : > { %vm2326_vm2 = vcmp.gt.s32.totalorder %v2325_v5, 0 }
 0x72e   : > { %v2327_v17 = vsel %vm2326_vm2, %v2325_v5, 0 }
 0x72f   : > { %v2329_v12 = vand.u32 31, %v2327_v17  ;;  %v2328_v16 = vshrl.u32 %v2327_v17, 5 }
 0x731   : > { %v2330_v15 = vsub.s32 32, %v2329_v12  ;;  %v2332_v10 = vshll.u32 %v5030_v47, %v2329_v12  ;;  %v2335_v18 = vshll.u32 %v5031_v49, %v2329_v12  ;;  %v2338_v39 = vshll.u32 %v5032_v52, %v2329_v12 }
 0x732   : > { %v2341_v44 = vshll.u32 %v5033_v55, %v2329_v12  ;;  %v2344_v48 = vshll.u32 %v5034_v58, %v2329_v12  ;;  %vm2347_vm5 = vcmp.lt.s32.totalorder %v2328_v16, 1  ;;  %vm2350_vm8 = vcmp.lt.s32.totalorder %v2328_v16, 4 }
 0x733   : > { %v2333_v35 = vshrl.u32 %v5031_v49, %v2330_v15  ;;  %v2336_v38 = vshrl.u32 %v5032_v52, %v2330_v15  ;;  %v2339_v43 = vshrl.u32 %v5033_v55, %v2330_v15  ;;  %v2342_v45 = vshrl.u32 %v5034_v58, %v2330_v15 }
 0x734   : > { %v2345_v34 = vshrl.u32 %v5035_v61, %v2330_v15  ;;  %v2331_v19 = vshrl.u32 %v5030_v47, %v2330_v15  ;;  %vm2349_vm13 = vcmp.lt.s32.totalorder %v2328_v16, 3  ;;  %vm2348_vm10 = vcmp.lt.s32.totalorder %v2328_v16, 2 }
 0x735   : > { %v2334_v40 = vor.u32 %v2333_v35, %v2332_v10  ;;  %v2337_v56 = vor.u32 %v2336_v38, %v2335_v18  ;;  %v2340_v41 = vor.u32 %v2339_v43, %v2338_v39  ;;  %v2343_v57 = vor.u32 %v2342_v45, %v2341_v44 }
 0x736   : > { %v2346_v54 = vor.u32 %v2345_v34, %v2344_v48 }
 0x737   : > { %v2352_v59 = vsel %vm2350_vm8, %v2340_v41, 2102212464  ;;  %v2355_v50 = vsel %vm2347_vm5, %v2334_v40, %v2337_v56  ;;  %v2359_v30 = vsel %vm2347_vm5, %v2337_v56, %v2340_v41  ;;  %v2356_v2 = vsel %vm2350_vm8, %v2343_v57, 920167782 }
 0x738   : > { %v2360_v3 = vsel %vm2350_vm8, %v2346_v54, 1326507024  ;;  %v2357_v4 = vsel %vm2349_vm13, %v2340_v41, %v2356_v2  ;;  %v2351_v24 = vsel %vm2347_vm5, %v2331_v19, %v2334_v40  ;;  %v2353_v37 = vsel %vm2349_vm13, %v2337_v56, %v2352_v59 }
 0x739   : > { %v2361_v6 = vsel %vm2349_vm13, %v2343_v57, %v2360_v3  ;;  %v2358_v42 = vsel %vm2348_vm10, %v2355_v50, %v2357_v4  ;;  %v2354_v17 = vsel %vm2348_vm10, %v2351_v24, %v2353_v37  ;;  %vm2407_vm5 = vweird.f32 %v5669_v0 }
 0x73a   : > { %v2362_v9 = vsel %vm2348_vm10, %v2359_v30, %v2361_v6  ;;  %v5689_v8 = vmul.u32.u64.low %v2363_v23, %v2358_v42  ;;  %v5690_v5 = vmul.u32.u64.high %v2363_v23, %v2358_v42, %v5689_v8  ;;  %v2370_v13 = vmul.u32 %v2363_v23, %v2354_v17 }
 0x73b   : > { %v5686_v1 = vmul.u32.u64.low %v2363_v23, %v2362_v9  ;;  %v5687_v14 = vmul.u32.u64.high %v2363_v23, %v2362_v9, %v5686_v1  ;;  %vm6009_vm8 = vcmask 261120  }
 0x73c   : > { %v2373_v12 = vadd.s32 1, %v5690_v5  ;;  %vm6010_vm13 = vmmov %vm6009_vm8 }
 0x73d   : > { %vm2372_vm7 = vc.u32 %v5687_v14, %v5689_v8  ;;  %v2371_v34 = vadd.s32 %v5689_v8, %v5687_v14  ;;  %vm6011_vm10 = vmmov %vm6009_vm8 }
 0x73e   : > { %v2374_v15 = vsel %vm2372_vm7, %v2373_v12, %v5690_v5  ;;  %vm6012_vm7 = vmmov %vm6009_vm8 }
 0x73f   : > { %v2375_v16 = vadd.s32 %v2374_v15, %v2370_v13 }
 0x741   : > { %v2376_v10 = vadd.s32 536870912, %v2375_v16 }
 0x743   : > { %v2377_v18 = vshrl.u32 %v2376_v10, 30 }
 0x745   : > { %v2378_v35 = vshll.u32 %v2377_v18, 30  ;;  %v2401_v3 = vsub.s32 4, %v2377_v18 }
 0x747   : > { %v2379_v38 = vsub.s32 %v2375_v16, %v2378_v35  ;;  %v2402_v23 = vsel %vm2317_vm6, %v2401_v3, %v2377_v18  ;;  %v2423_v16 = vpop.permute.xlu1 %2422 }
 0x748   : > { %v2404_v37 = vsel %vm2316_vm4, 0, %v2402_v23 }
 0x749   : > { %v2381_v39 = vsub.s32 0, %v2379_v38  ;;  %v2408_v42 = vadd.s32 3, %v2404_v37 }
 0x74b   : > { %v4034_v43 = vmin.u32 %v2381_v39, %v2379_v38  ;;  %v2409_v9 = vand.u32 3, %v2408_v42 }
 0x74d   : > { %v2383_v44 = vclz %v4034_v43  ;;  %vm2414_vm12 = vcmp.eq.s32.totalorder %v2409_v9, 2  ;;  %vm2411_vm9 = vcmp.eq.s32.totalorder %v2409_v9, 0  ;;  %vm2410_vm2 = vcmp.lt.s32.totalorder %v2409_v9, 2 }
 0x74f   : > { %v4035_v45 = vadd.s32 4294967294, %v2383_v44 }
 0x751   : > { %vm4036_vm15 = vcmp.lt.s32.totalorder %v4035_v45, 0 }
 0x752   : > { %v2386_v48 = vsel %vm4036_vm15, 0, %v4035_v45  ;;  %vm6013_vm15 = vnez %v6001_v62  ;;  %v4077_v45 = vld [vmem:[%s5960_s2 + $0x10] sm:$0xff] }
 0x753   : > { %v2387_v51 = vsub.s32 32, %v2386_v48  ;;  %v2391_v40 = vsub.s32 4294967266, %v2386_v48  ;;  %v2388_v56 = vshll.u32 %v2379_v38, %v2386_v48 }
 0x755   : > { %v2389_v41 = vshrl.u32 %v2371_v34, %v2387_v51  ;;  %v2392_v57 = vadd.s32 127, %v2391_v40  ;;  %v2975_v51 = vpop.permute.xlu0 %2974 }
 0x757   : > { %v2390_v54 = vor.u32 %v2389_v41, %v2388_v56  ;;  %v2393_v59 = vshll.u32 %v2392_v57, 23  ;;  %v3058_v57 = vpop.permute.xlu1 %3057 }
 0x759   : > { %v2394_v50 = vor.u32 4788187, %v2393_v59  ;;  %v2397_v19 = vcvt.s32.f32 %v2390_v54 }
 0x75b   : > { %v2395_v30 = vand.u32 2147483647, %v2394_v50 }
 0x75d   : > { %v2398_v2 = vmul.f32 %v2397_v19, %v2395_v30 }
 0x75f   : > { %v2399_v4 = vxor.u32 2147483648, %v2398_v2 }
 0x761   : > { %v2400_v6 = vsel %vm2317_vm6, %v2399_v4, %v2398_v2  ;;  %vm2889_vm6 = vcmp.eq.s32.totalorder %v5225_v29, 27 }
 0x762   : > { %v2403_v24 = vsel %vm2316_vm4, %v5669_v0, %v2400_v6  ;;  %vm6015_vm4 = vmmov %vm6012_vm7 }
 0x763   : > { %4949 = vcosq.f32 %v2403_v24 }
 0x764   : > { %4951 = vsinq.f32 %v2403_v24 }
 0x76d   : > { %v4950_v1 = vpop.eup %4949 }
 0x76e   : > { %v4952_v14 = vpop.eup %4951  ;;  %v2415_v8 = vxor.u32 2147483648, %v4950_v1 }
 0x76f   : > { %v2412_v5 = vxor.u32 2147483648, %v4952_v14 }
 0x770   : > { %v2416_v17 = vsel %vm2414_vm12, %v2415_v8, %v4952_v14  ;;  %vm6016_vm12 = vmmov %vm6015_vm4 }
 0x771   : > { %v2413_v12 = vsel %vm2411_vm9, %v4950_v1, %v2412_v5  ;;  %vm6017_vm9 = vmmov 1  }
 0x772   : > { %v2417_v11 = vsel %vm2410_vm2, %v2413_v12, %v2416_v17  ;;  %vm4792_vm2 = vmpackc.low %vm2889_vm6, %vm6017_vm9 }
 0x773   : > { %v2418_v13 = vsel %vm2407_vm5, nan, %v2417_v11  ;;  %vm6018_vm5 = vmmov %vm6015_vm4 }
 0x774   : > { %v2419_v15 = vmul.f32 %v2418_v13, %v2418_v13 }
 0x776   : > { %v2425_v10 = vmul.f32 %v2423_v16, %v2419_v15 }
 0x778   : > { %v2426_v18 = vadd.f32 %v2425_v10, %v5666_v7 }
 0x77a   : > { %4504 = vmatmul.mubr.msk.f32.vlgmr.msra.gmra.mrb[20].mxu0 %vm6009_vm8, %v2426_v18  ;;  %4515 = vmatmul.mubr.msk.f32.vlgmr.msra.gmra.mrb[16].mxu1 %vm6010_vm13, %v2426_v18  ;;  %vm6019_vm8 = vcmask 457728  }
 0x77b   : > { %4766 = vmatpush3.bf16.msk.msra.mxu0 %vm5459_vm0, %v5027_v31  ;;  %4772 = vmatpush3.bf16.msk.msra.mxu1 %vm5300_vm3, %v5027_v31  ;;  %vm2806_vm3 = vcmp.eq.s32.totalorder %v5221_v28, 18  ;;  %vm2807_vm0 = vcmp.eq.s32.totalorder %v5225_v29, 18 }
 0x77c   : > { %4767 = vmatprep.subr.bf16.mxu0 %v5026_v27  ;;  %4773 = vmatprep.subr.bf16.mxu1 %v5026_v27 }
 0x77d   : > { %4525 = vmatprep.mubr.msk.f32.mxu0 %vm5987_vm14, %v5029_v33  ;;  %4536 = vmatprep.mubr.msk.f32.mxu1 %vm5987_vm14, %v5029_v33 }
 0x77f   : > { %4769 = vmatpush3.bf16.msk.msra.mxu0 %vm5473_vm1, %v5027_v31  ;;  %4775 = vmatpush3.bf16.msk.msra.mxu1 %vm5316_vm11, %v5027_v31  ;;  %vm4786_vm1 = vmpackc.low %vm2807_vm0, %vm2806_vm3  ;;  %vm6014_vm11 = vnez %v6005_v63 }
 0x780   : > { %4776 = vmatprep.subr.bf16.mxu0 %v5026_v27  ;;  %4783 = vmatprep.subr.bf16.mxu1 %v5026_v27 }
 0x782   : > { %4526 = vmatmul.mubr.msk.f32.vlgmr.msra.gmra.mrb[22].mxu0 %vm6011_vm10, %v2426_v18  ;;  %4537 = vmatmul.mubr.msk.f32.vlgmr.msra.gmra.mrb[18].mxu1 %vm6012_vm7, %v2426_v18 }
 0x783   : > { %4779 = vmatpush3.bf16.msk.msra.mxu0 %vm6013_vm15, %v5564_v32  ;;  %4784 = vmatpush3.bf16.msra.mxu1 %v5026_v27 }
 0x784   : > { %4780 = vmatprep.subr.bf16.mxu0 %v5026_v27  ;;  %4785 = vmatprep.subr.bf16.mxu1 %v5026_v27 }
 0x785   : > { %4547 = vmatprep.mubr.msk.f32.mxu0 %vm5987_vm14, %v5029_v33  ;;  %4558 = vmatprep.mubr.msk.f32.mxu1 %vm5987_vm14, %v5029_v33 }
 0x787   : > { %4782 = vmatpush3.bf16.msk.msra.mxu0 %vm6014_vm11, %v5027_v31  ;;  %4787 = vmatpush3.bf16.msk.msra.mxu1 %vm4786_vm1, %v5027_v31 }
 0x788   : > { %4788 = vmatprep.subr.bf16.mxu0 %v5026_v27  ;;  %4794 = vmatprep.subr.bf16.mxu1 %v5026_v27 }
 0x78a   : > { %4548 = vmatmul.mubr.msk.f32.vlgmr.msra.gmra.mrb[24].mxu0 %vm6015_vm4, %v2426_v18  ;;  %4559 = vmatmul.mubr.msk.f32.vlgmr.msra.gmra.mrb[20].mxu1 %vm6016_vm12, %v2426_v18 }
 0x78b   : > { %4789 = vmatpush3.bf16.msra.mxu0 %v5026_v27  ;;  %4569 = vmatprep.mubr.msk.f32.mxu0 %vm5987_vm14, %v5029_v33 }
 0x78c   : > { %4790 = vmatprep.subr.bf16.mxu0 %v5026_v27  ;;  %4586 = vmatprep.mubr.msk.f32.mxu1 %vm5987_vm14, %v5029_v33 }
 0x78f   : > { %4793 = vmatpush3.bf16.msk.msra.mxu0 %vm4792_vm2, %v5564_v32 }
 0x790   : > { %4589 = vmatprep.subr.mxu0 %v5029_v33 }
 0x792   : > { %4570 = vmatmul.mubr.msk.f32.vlgmr.msra.gmra.mrb[26].mxu0 %vm6018_vm5, %v2426_v18  ;;  %vm6020_vm5 = vcmask 64512  }
 0x793   : > { %4591 = vmatprep.mubr.msk.f32.mxu0 %vm5987_vm14, %v5029_v33 }
 0x84d   : > { %v2508_v28 = vpop.f32.mrb[20].mxu0  ;;  %v2590_v29 = vpop.f32.mrb[16].mxu1 }
 0x84e   : > { %v4795_v60 = vpack.c.bf16 %v2590_v29, %v2508_v28  ;;  %v4505_v36 = vpop.f32.mrb[21].mxu0  ;;  %v4516_v46 = vpop.f32.mrb[17].mxu1 }
 0x850   : > { %4796 = vmatpush3.bf16.msra.mxu1 %v4795_v60 }
 0x851   : > { %4797 = vmatprep.subr.bf16.mxu1 %v5026_v27 }
 0x855   : > { %v2660_v53 = vpop.f32.mrb[22].mxu0  ;;  %v2730_v62 = vpop.f32.mrb[18].mxu1 }
 0x856   : > { %v4798_v63 = vpack.c.bf16 %v2730_v62, %v2660_v53  ;;  %v4527_v0 = vpop.f32.mrb[23].mxu0  ;;  %v4538_v32 = vpop.f32.mrb[19].mxu1 }
 0x858   : > { %4799 = vmatpush3.bf16.msra.mxu1 %v4798_v63 }
 0x859   : > { %4800 = vmatprep.subr.bf16.mxu1 %v5026_v27 }
 0x85d   : > { %v2800_v35 = vpop.f32.mrb[24].mxu0  ;;  %v2882_v38 = vpop.f32.mrb[20].mxu1 }
 0x85e   : > { %v4801_v39 = vpack.c.bf16 %v2882_v38, %v2800_v35  ;;  %v4549_v43 = vpop.f32.mrb[25].mxu0  ;;  %v4560_v44 = vpop.f32.mrb[21].mxu1 }
 0x860   : > { %4802 = vmatpush3.bf16.msra.mxu1 %v4801_v39 }
 0x861   : > { %4584 = vmatprep.subr.mxu1 %v5029_v33 }
 0x865   : > { %v2964_v48 = vpop.f32.mrb[26].mxu0 }
 0x866   : > { %v4571_v34 = vpop.f32.mrb[27].mxu0  ;;  %4585 = vmatpush3.msra.mxu1 %v2964_v48 }
 0x867   : > { %4587 = vmatmul.mubr.msk.f32.vlgmr.msra.gmra.mrb[22].mxu1 %vm6019_vm8, %v4077_v45  ;;  %4809 = vmatprep.subr.bf16.mxu1 %v5026_v27 }
 0x868   : > { %4613 = vmatprep.mubr.msk.f32.mxu1 %vm5987_vm14, %v5029_v33 }
 0x93a   : > { %v3046_v40 = vpop.f32.mrb[22].mxu1 }
 0x93b   : > { %v5769_v56 = vadd.f32 %v3046_v40, %v2975_v51  ;;  %v4588_v41 = vpop.f32.mrb[23].mxu1 }
 0x93d   : > { %v5772_v54 = vmul.f32 %v3058_v57, %v5769_v56 }
 0x93f   : > { %v3064_v59 = vand.u32 2139095040, %v5772_v54  ;;  %v3061_v2 = vand.u32 2147483647, %v5772_v54  ;;  %vm3063_vm11 = vcmp.lt.s32.totalorder %v5772_v54, 0  ;;  %vm3153_vm2 = vweird.f32 %v5772_v54 }
 0x941   : > { %v3065_v50 = vshrl.u32 %v3064_v59, 23  ;;  %v3068_v6 = vand.u32 8388607, %v3061_v2  ;;  %vm3062_vm6 = vcmp.le.f32.partialorder %v3061_v2, 0.7853982 }
 0x943   : > { %v4081_v30 = vadd.s32 4294967169, %v3065_v50  ;;  %v3069_v13 = vor.u32 8388608, %v3068_v6 }
 0x945   : > { %v3071_v19 = vadd.s32 1, %v4081_v30  ;;  %v3109_v32 = vshll.u32 %v3069_v13, 8 }
 0x947   : > { %vm3072_vm13 = vcmp.gt.s32.totalorder %v3071_v19, 0 }
 0x948   : > { %v3073_v3 = vsel %vm3072_vm13, %v3071_v19, 0 }
 0x949   : > { %v3075_v4 = vand.u32 31, %v3073_v3  ;;  %v3074_v24 = vshrl.u32 %v3073_v3, 5 }
 0x94b   : > { %v3076_v23 = vsub.s32 32, %v3075_v4  ;;  %v3078_v37 = vshll.u32 %v5030_v47, %v3075_v4  ;;  %v3081_v42 = vshll.u32 %v5031_v49, %v3075_v4  ;;  %v3084_v14 = vshll.u32 %v5032_v52, %v3075_v4 }
 0x94c   : > { %v3087_v5 = vshll.u32 %v5033_v55, %v3075_v4  ;;  %v3090_v12 = vshll.u32 %v5034_v58, %v3075_v4  ;;  %vm3093_vm3 = vcmp.lt.s32.totalorder %v3074_v24, 1  ;;  %vm3096_vm0 = vcmp.lt.s32.totalorder %v3074_v24, 4 }
 0x94d   : > { %v3079_v9 = vshrl.u32 %v5031_v49, %v3076_v23  ;;  %v3082_v1 = vshrl.u32 %v5032_v52, %v3076_v23  ;;  %v3085_v8 = vshrl.u32 %v5033_v55, %v3076_v23  ;;  %v3088_v17 = vshrl.u32 %v5034_v58, %v3076_v23 }
 0x94e   : > { %v3091_v11 = vshrl.u32 %v5035_v61, %v3076_v23  ;;  %v3077_v46 = vshrl.u32 %v5030_v47, %v3076_v23  ;;  %vm3095_vm10 = vcmp.lt.s32.totalorder %v3074_v24, 3  ;;  %vm3094_vm7 = vcmp.lt.s32.totalorder %v3074_v24, 2 }
 0x94f   : > { %v3080_v15 = vor.u32 %v3079_v9, %v3078_v37  ;;  %v3083_v16 = vor.u32 %v3082_v1, %v3081_v42  ;;  %v3086_v10 = vor.u32 %v3085_v8, %v3084_v14  ;;  %v3089_v18 = vor.u32 %v3088_v17, %v3087_v5 }
 0x950   : > { %v3092_v28 = vor.u32 %v3091_v11, %v3090_v12 }
 0x951   : > { %v3098_v29 = vsel %vm3096_vm0, %v3086_v10, 2102212464  ;;  %v3101_v60 = vsel %vm3093_vm3, %v3080_v15, %v3083_v16  ;;  %v3105_v36 = vsel %vm3093_vm3, %v3083_v16, %v3086_v10  ;;  %v3102_v53 = vsel %vm3096_vm0, %v3089_v18, 920167782 }
 0x952   : > { %v3106_v62 = vsel %vm3096_vm0, %v3092_v28, 1326507024  ;;  %v3103_v63 = vsel %vm3095_vm10, %v3086_v10, %v3102_v53  ;;  %v3097_v35 = vsel %vm3093_vm3, %v3077_v46, %v3080_v15  ;;  %v3099_v38 = vsel %vm3095_vm10, %v3083_v16, %v3098_v29 }
 0x953   : > { %v3107_v0 = vsel %vm3095_vm10, %v3089_v18, %v3106_v62  ;;  %v3104_v39 = vsel %vm3094_vm7, %v3101_v60, %v3103_v63  ;;  %v3100_v51 = vsel %vm3094_vm7, %v3097_v35, %v3099_v38 }
 0x954   : > { %v3108_v43 = vsel %vm3094_vm7, %v3105_v36, %v3107_v0  ;;  %v5792_v48 = vmul.u32.u64.low %v3109_v32, %v3104_v39  ;;  %v5793_v34 = vmul.u32.u64.high %v3109_v32, %v3104_v39, %v5792_v48  ;;  %v3116_v41 = vmul.u32 %v3109_v32, %v3100_v51 }
 0x955   : > { %v5789_v44 = vmul.u32.u64.low %v3109_v32, %v3108_v43  ;;  %v5790_v45 = vmul.u32.u64.high %v3109_v32, %v3108_v43, %v5789_v44 }
 0x956   : > { %v3119_v40 = vadd.s32 1, %v5793_v34  ;;  %v3169_v44 = vpop.permute.xlu0 %3168 }
 0x957   : > { %vm3118_vm15 = vc.u32 %v5790_v45, %v5792_v48  ;;  %v3117_v42 = vadd.s32 %v5792_v48, %v5790_v45 }
 0x958   : > { %v3120_v57 = vsel %vm3118_vm15, %v3119_v40, %v5793_v34  ;;  %v4085_v34 = vld [vmem:[%s5963_s5 + $0x10] sm:$0xff] }
 0x959   : > { %v3121_v59 = vadd.s32 %v3120_v57, %v3116_v41 }
 0x95b   : > { %v3122_v50 = vadd.s32 536870912, %v3121_v59 }
 0x95d   : > { %v3123_v30 = vshrl.u32 %v3122_v50, 30 }
 0x95f   : > { %v3124_v19 = vshll.u32 %v3123_v30, 30  ;;  %v3147_v10 = vsub.s32 4, %v3123_v30 }
 0x961   : > { %v3125_v3 = vsub.s32 %v3121_v59, %v3124_v19  ;;  %v3148_v29 = vsel %vm3063_vm11, %v3147_v10, %v3123_v30  ;;  %v3263_v19 = vpop.permute.xlu0 %3262 }
 0x962   : > { %v3150_v36 = vsel %vm3062_vm6, 0, %v3148_v29 }
 0x963   : > { %v3127_v4 = vsub.s32 0, %v3125_v3  ;;  %v3154_v46 = vadd.s32 3, %v3150_v36 }
 0x965   : > { %v4082_v6 = vmin.u32 %v3127_v4, %v3125_v3  ;;  %v3155_v53 = vand.u32 3, %v3154_v46 }
 0x967   : > { %v3129_v23 = vclz %v4082_v6  ;;  %vm3160_vm4 = vcmp.eq.s32.totalorder %v3155_v53, 2  ;;  %vm3157_vm12 = vcmp.eq.s32.totalorder %v3155_v53, 0  ;;  %vm3156_vm9 = vcmp.lt.s32.totalorder %v3155_v53, 2 }
 0x969   : > { %v4083_v24 = vadd.s32 4294967294, %v3129_v23 }
 0x96b   : > { %vm4084_vm1 = vcmp.lt.s32.totalorder %v4083_v24, 0 }
 0x96c   : > { %v3132_v37 = vsel %vm4084_vm1, 0, %v4083_v24 }
 0x96d   : > { %v3133_v9 = vsub.s32 32, %v3132_v37  ;;  %v3137_v1 = vsub.s32 4294967266, %v3132_v37  ;;  %v3134_v14 = vshll.u32 %v3125_v3, %v3132_v37 }
 0x96f   : > { %v3135_v8 = vshrl.u32 %v3117_v42, %v3133_v9  ;;  %v3138_v5 = vadd.s32 127, %v3137_v1 }
 0x971   : > { %v3136_v17 = vor.u32 %v3135_v8, %v3134_v14  ;;  %v3139_v12 = vshll.u32 %v3138_v5, 23 }
 0x973   : > { %v3140_v11 = vor.u32 4788187, %v3139_v12  ;;  %v3143_v15 = vcvt.s32.f32 %v3136_v17 }
 0x975   : > { %v3141_v13 = vand.u32 2147483647, %v3140_v11 }
 0x977   : > { %v3144_v16 = vmul.f32 %v3143_v15, %v3141_v13 }
 0x979   : > { %v3145_v18 = vxor.u32 2147483648, %v3144_v16 }
 0x97b   : > { %v3146_v28 = vsel %vm3063_vm11, %v3145_v18, %v3144_v16 }
 0x97c   : > { %v3149_v60 = vsel %vm3062_vm6, %v5772_v54, %v3146_v28  ;;  %v3378_v54 = vmul.u32 2, %v5197_v22 }
 0x97d   : > { %4953 = vcosq.f32 %v3149_v60 }
 0x97e   : > { %4955 = vsinq.f32 %v3149_v60  ;;  %v3379_v51 = vsub.s32 %v5192_v20, %v3378_v54  ;;  %v3380_v40 = vsub.s32 %v5195_v21, %v3378_v54  ;;  %v3382_v41 = vsub.s32 %v5211_v26, %v3378_v54  ;;  %v3180_v26 = vpop.permute.xlu1 %3179 }
 0x980   : > { %vm3383_vm8 = vcmp.eq.s32.totalorder %v3379_v51, 4294967295  ;;  %vm3384_vm13 = vcmp.eq.s32.totalorder %v3380_v40, 4294967295  ;;  %vm3468_vm3 = vcmp.eq.s32.totalorder %v3379_v51, 0  ;;  %vm3469_vm0 = vcmp.eq.s32.totalorder %v3380_v40, 0 }
 0x981   : > { %vm4804_vm10 = vmpackc.low %vm3384_vm13, %vm3383_vm8  ;;  %vm3386_vm1 = vcmp.eq.s32.totalorder %v3382_v41, 4294967295  ;;  %vm3471_vm6 = vcmp.eq.s32.totalorder %v3382_v41, 0  ;;  %vm3633_vm8 = vcmp.eq.s32.totalorder %v3380_v40, 2 }
 0x982   : > { %vm4810_vm7 = vmpackc.low %vm3469_vm0, %vm3468_vm3 }
 0x983   : > { %4811 = vmatpush3.bf16.msk.msra.mxu1 %vm4810_vm7, %v5027_v31 }
 0x984   : > { %4812 = vmatprep.subr.bf16.mxu1 %v5026_v27 }
 0x987   : > { %v4954_v62 = vpop.eup %4953 }
 0x988   : > { %v4956_v63 = vpop.eup %4955  ;;  %v3161_v0 = vxor.u32 2147483648, %v4954_v62 }
 0x989   : > { %v3158_v32 = vxor.u32 2147483648, %v4956_v63 }
 0x98a   : > { %v3162_v35 = vsel %vm3160_vm4, %v3161_v0, %v4956_v63 }
 0x98b   : > { %v3159_v38 = vsel %vm3157_vm12, %v4954_v62, %v3158_v32 }
 0x98c   : > { %v3163_v2 = vsel %vm3156_vm9, %v3159_v38, %v3162_v35  ;;  %vm3550_vm9 = vcmp.eq.s32.totalorder %v3379_v51, 1 }
 0x98d   : > { %v3164_v39 = vsel %vm3153_vm2, nan, %v3163_v2  ;;  %vm3551_vm2 = vcmp.eq.s32.totalorder %v3380_v40, 1 }
 0x98e   : > { %v3165_v43 = vmul.f32 %v3164_v39, %v3164_v39  ;;  %vm5825_vm13 = vmpackc.low %vm3551_vm2, %vm3550_vm9 }
 0x990   : > { %v3171_v45 = vmul.f32 %v3169_v44, %v3165_v43 }
 0x992   : > { %v3172_v48 = vadd.f32 %v3171_v45, %v5769_v56  ;;  %v3381_v56 = vsub.s32 %v5208_v25, %v3378_v54 }
 0x994   : > { %4590 = vmatpush3.msra.mxu0 %v3172_v48  ;;  %vm3385_vm15 = vcmp.eq.s32.totalorder %v3381_v56, 4294967295  ;;  %vm3470_vm11 = vcmp.eq.s32.totalorder %v3381_v56, 0  ;;  %vm3552_vm0 = vcmp.eq.s32.totalorder %v3381_v56, 1 }
 0x995   : > { %4592 = vmatmul.mubr.msk.f32.vlgmr.msra.gmra.mrb[28].mxu0 %vm6020_vm5, %v4085_v34  ;;  %4803 = vmatprep.subr.bf16.mxu0 %v5026_v27  ;;  %vm4807_vm4 = vmpackc.low %vm3386_vm1, %vm3385_vm15  ;;  %vm3632_vm5 = vcmp.eq.s32.totalorder %v3379_v51, 2  ;;  %vm3634_vm15 = vcmp.eq.s32.totalorder %v3381_v56, 2  ;;  %vm3635_vm1 = vcmp.eq.s32.totalorder %v3382_v41, 2 }
 0x996   : > { %4602 = vmatprep.mubr.msk.f32.mxu0 %vm5987_vm14, %v5029_v33  ;;  %4805 = vmatpush3.bf16.msk.msra.mxu0 %vm4804_vm10, %v5027_v31  ;;  %vm4813_vm12 = vmpackc.low %vm3471_vm6, %vm3470_vm11  ;;  %vm3553_vm10 = vcmp.eq.s32.totalorder %v3382_v41, 1 }
 0x997   : > { %4806 = vmatprep.subr.bf16.mxu0 %v5026_v27  ;;  %4814 = vmatpush3.bf16.msk.msra.mxu1 %vm4813_vm12, %v5027_v31  ;;  %vm5829_vm3 = vmpackc.low %vm3633_vm8, %vm3632_vm5 }
 0x998   : > { %4821 = vmatprep.subr.bf16.mxu1 %v5026_v27  ;;  %vm5833_vm7 = vmpackc.low %vm3553_vm10, %vm3552_vm0 }
 0x999   : > { %vm5837_vm11 = vmpackc.low %vm3635_vm1, %vm3634_vm15 }
 0x99a   : > { %4808 = vmatpush3.bf16.msk.msra.mxu0 %vm4807_vm4, %v5027_v31 }
 0x99b   : > { %4815 = vmatprep.subr.bf16.mxu0 %v5026_v27 }
 0xa68   : > { %v3251_v57 = vpop.f32.mrb[28].mxu0 }
 0xa69   : > { %v3252_v59 = vadd.f32 %v3251_v57, %v3180_v26  ;;  %v4593_v50 = vpop.f32.mrb[29].mxu0 }
 0xa6b   : > { %v5842_v30 = vadd.f32 %v3252_v59, %v5666_v7 }
 0xa6d   : > { %v5845_v3 = vmul.f32 %v3263_v19, %v5842_v30 }
 0xa6f   : > { %v3269_v4 = vand.u32 2139095040, %v5845_v3  ;;  %v3266_v37 = vand.u32 2147483647, %v5845_v3  ;;  %vm3268_vm0 = vcmp.lt.s32.totalorder %v5845_v3, 0 }
 0xa71   : > { %v3270_v6 = vshrl.u32 %v3269_v4, 23  ;;  %v3273_v1 = vand.u32 8388607, %v3266_v37  ;;  %vm3267_vm10 = vcmp.le.f32.partialorder %v3266_v37, 0.7853982 }
 0xa73   : > { %v4088_v23 = vadd.s32 4294967169, %v3270_v6  ;;  %v3274_v28 = vor.u32 8388608, %v3273_v1 }
 0xa75   : > { %v3276_v24 = vadd.s32 1, %v4088_v23 }
 0xa77   : > { %vm3277_vm6 = vcmp.gt.s32.totalorder %v3276_v24, 0 }
 0xa78   : > { %v3278_v42 = vsel %vm3277_vm6, %v3276_v24, 0 }
 0xa79   : > { %v3280_v9 = vand.u32 31, %v3278_v42  ;;  %v3279_v7 = vshrl.u32 %v3278_v42, 5 }
 0xa7b   : > { %v3281_v14 = vsub.s32 32, %v3280_v9  ;;  %v3283_v8 = vshll.u32 %v5030_v47, %v3280_v9  ;;  %v3286_v5 = vshll.u32 %v5031_v49, %v3280_v9  ;;  %v3289_v11 = vshll.u32 %v5032_v52, %v3280_v9 }
 0xa7c   : > { %v3292_v15 = vshll.u32 %v5033_v55, %v3280_v9  ;;  %v3295_v10 = vshll.u32 %v5034_v58, %v3280_v9  ;;  %vm3298_vm4 = vcmp.lt.s32.totalorder %v3279_v7, 1  ;;  %vm3301_vm12 = vcmp.lt.s32.totalorder %v3279_v7, 4 }
 0xa7d   : > { %v3284_v17 = vshrl.u32 %v5031_v49, %v3281_v14  ;;  %v3287_v12 = vshrl.u32 %v5032_v52, %v3281_v14  ;;  %v3290_v13 = vshrl.u32 %v5033_v55, %v3281_v14  ;;  %v3293_v16 = vshrl.u32 %v5034_v58, %v3281_v14 }
 0xa7e   : > { %v3296_v18 = vshrl.u32 %v5035_v61, %v3281_v14  ;;  %v3282_v63 = vshrl.u32 %v5030_v47, %v3281_v14  ;;  %vm3300_vm9 = vcmp.lt.s32.totalorder %v3279_v7, 3  ;;  %vm3299_vm2 = vcmp.lt.s32.totalorder %v3279_v7, 2 }
 0xa7f   : > { %v3285_v29 = vor.u32 %v3284_v17, %v3283_v8  ;;  %v3288_v60 = vor.u32 %v3287_v12, %v3286_v5  ;;  %v3291_v36 = vor.u32 %v3290_v13, %v3289_v11  ;;  %v3294_v46 = vor.u32 %v3293_v16, %v3292_v15 }
 0xa80   : > { %v3297_v49 = vor.u32 %v3296_v18, %v3295_v10  ;;  %v3314_v61 = vshll.u32 %v3274_v28, 8 }
 0xa81   : > { %v3303_v53 = vsel %vm3301_vm12, %v3291_v36, 2102212464  ;;  %v3306_v52 = vsel %vm3298_vm4, %v3285_v29, %v3288_v60  ;;  %v3310_v62 = vsel %vm3298_vm4, %v3288_v60, %v3291_v36  ;;  %v3307_v55 = vsel %vm3301_vm12, %v3294_v46, 920167782 }
 0xa82   : > { %v3311_v0 = vsel %vm3301_vm12, %v3297_v49, 1326507024  ;;  %v3308_v58 = vsel %vm3300_vm9, %v3291_v36, %v3307_v55  ;;  %v3302_v35 = vsel %vm3298_vm4, %v3282_v63, %v3285_v29  ;;  %v3304_v38 = vsel %vm3300_vm9, %v3288_v60, %v3303_v53 }
 0xa83   : > { %v3312_v32 = vsel %vm3300_vm9, %v3294_v46, %v3311_v0  ;;  %v3309_v2 = vsel %vm3299_vm2, %v3306_v52, %v3308_v58  ;;  %v3305_v34 = vsel %vm3299_vm2, %v3302_v35, %v3304_v38  ;;  %vm3358_vm4 = vweird.f32 %v5845_v3  ;;  %v3374_v0 = vpop.permute.xlu1 %3373  ;;  %v3715_v38 = vld [vmem:[%s5966_s8 + $0x8] sm:$0xff] }
 0xa84   : > { %v3313_v39 = vsel %vm3299_vm2, %v3310_v62, %v3312_v32  ;;  %v5865_v45 = vmul.u32.u64.low %v3314_v61, %v3309_v2  ;;  %v5866_v48 = vmul.u32.u64.high %v3314_v61, %v3309_v2, %v5865_v45  ;;  %v3321_v54 = vmul.u32 %v3314_v61, %v3305_v34 }
 0xa85   : > { %v5862_v43 = vmul.u32.u64.low %v3314_v61, %v3313_v39  ;;  %v5863_v44 = vmul.u32.u64.high %v3314_v61, %v3313_v39, %v5862_v43  ;;  %vm6029_vm12 = vcmask 261120  }
 0xa86   : > { %v3324_v47 = vadd.s32 1, %v5866_v48  ;;  %vm6030_vm9 = vmmov %vm6029_vm12  ;;  %v3721_v43 = vpop.permute.xlu0 %3720 }
 0xa87   : > { %vm3323_vm5 = vc.u32 %v5863_v44, %v5865_v45  ;;  %v3322_v23 = vadd.s32 %v5865_v45, %v5863_v44  ;;  %v3726_v2 = vpop.permute.xlu1 %3725 }
 0xa88   : > { %v3325_v51 = vsel %vm3323_vm5, %v3324_v47, %v5866_v48 }
 0xa89   : > { %v3326_v40 = vadd.s32 %v3325_v51, %v3321_v54 }
 0xa8b   : > { %v3327_v56 = vadd.s32 536870912, %v3326_v40 }
 0xa8d   : > { %v3328_v41 = vshrl.u32 %v3327_v56, 30 }
 0xa8f   : > { %v3329_v26 = vshll.u32 %v3328_v41, 30  ;;  %v3352_v13 = vsub.s32 4, %v3328_v41 }
 0xa91   : > { %v3330_v57 = vsub.s32 %v3326_v40, %v3329_v26  ;;  %v3353_v10 = vsel %vm3268_vm0, %v3352_v13, %v3328_v41 }
 0xa92   : > { %v3355_v28 = vsel %vm3267_vm10, 0, %v3353_v10 }
 0xa93   : > { %v3332_v59 = vsub.s32 0, %v3330_v57  ;;  %v3359_v29 = vadd.s32 3, %v3355_v28 }
 0xa95   : > { %v4089_v50 = vmin.u32 %v3332_v59, %v3330_v57  ;;  %v3360_v60 = vand.u32 3, %v3359_v29 }
 0xa97   : > { %v3334_v19 = vclz %v4089_v50  ;;  %vm3365_vm15 = vcmp.eq.s32.totalorder %v3360_v60, 2  ;;  %vm3362_vm1 = vcmp.eq.s32.totalorder %v3360_v60, 0  ;;  %vm3361_vm6 = vcmp.lt.s32.totalorder %v3360_v60, 2 }
 0xa99   : > { %v4090_v4 = vadd.s32 4294967294, %v3334_v19 }
 0xa9b   : > { %vm4091_vm8 = vcmp.lt.s32.totalorder %v4090_v4, 0 }
 0xa9c   : > { %v3337_v6 = vsel %vm4091_vm8, 0, %v4090_v4 }
 0xa9d   : > { %v3338_v24 = vsub.s32 32, %v3337_v6  ;;  %v3342_v42 = vsub.s32 4294967266, %v3337_v6  ;;  %v3339_v9 = vshll.u32 %v3330_v57, %v3337_v6 }
 0xa9f   : > { %v3340_v1 = vshrl.u32 %v3322_v23, %v3338_v24  ;;  %v3343_v14 = vadd.s32 127, %v3342_v42 }
 0xaa1   : > { %v3341_v7 = vor.u32 %v3340_v1, %v3339_v9  ;;  %v3344_v8 = vshll.u32 %v3343_v14, 23 }
 0xaa3   : > { %v3345_v5 = vor.u32 4788187, %v3344_v8  ;;  %v3348_v12 = vcvt.s32.f32 %v3341_v7 }
 0xaa5   : > { %v3346_v17 = vand.u32 2147483647, %v3345_v5 }
 0xaa7   : > { %v3349_v11 = vmul.f32 %v3348_v12, %v3346_v17 }
 0xaa9   : > { %v3350_v15 = vxor.u32 2147483648, %v3349_v11 }
 0xaab   : > { %v3351_v16 = vsel %vm3268_vm0, %v3350_v15, %v3349_v11 }
 0xaac   : > { %v3354_v18 = vsel %vm3267_vm10, %v5845_v3, %v3351_v16 }
 0xaad   : > { %4957 = vcosq.f32 %v3354_v18 }
 0xaae   : > { %4959 = vsinq.f32 %v3354_v18 }
 0xab7   : > { %v4958_v36 = vpop.eup %4957 }
 0xab8   : > { %v4960_v46 = vpop.eup %4959  ;;  %v3366_v49 = vxor.u32 2147483648, %v4958_v36 }
 0xab9   : > { %v3363_v53 = vxor.u32 2147483648, %v4960_v46 }
 0xaba   : > { %v3367_v52 = vsel %vm3365_vm15, %v3366_v49, %v4960_v46 }
 0xabb   : > { %v3364_v62 = vsel %vm3362_vm1, %v4958_v36, %v3363_v53 }
 0xabc   : > { %v3368_v37 = vsel %vm3361_vm6, %v3364_v62, %v3367_v52 }
 0xabd   : > { %v3369_v63 = vsel %vm3358_vm4, nan, %v3368_v37 }
 0xabe   : > { %v3370_v55 = vmul.f32 %v3369_v63, %v3369_v63 }
 0xac0   : > { %v3376_v58 = vmul.f32 %v3374_v0, %v3370_v55 }
 0xac2   : > { %v3377_v32 = vadd.f32 %v3376_v58, %v5842_v30 }
 0xac4   : > { %4603 = vmatmul.mubr.msk.f32.vlgmr.msra.gmra.mrb[30].mxu0 %vm6029_vm12, %v3377_v32  ;;  %4614 = vmatmul.mubr.msk.f32.vlgmr.msra.gmra.mrb[24].mxu1 %vm6030_vm9, %v3377_v32 }
 0xac5   : > { %4817 = vmatpush3.bf16.msk.msra.mxu0 %vm5825_vm13, %v5027_v31  ;;  %4823 = vmatpush3.bf16.msk.msra.mxu1 %vm5829_vm3, %v5027_v31  ;;  %vm6031_vm13 = vmmov %vm6030_vm9 }
 0xac6   : > { %4818 = vmatprep.subr.bf16.mxu0 %v5026_v27  ;;  %4824 = vmatprep.subr.bf16.mxu1 %v5026_v27  ;;  %vm6032_vm3 = vmmov %vm6030_vm9  ;;  %v3714_v27 = vld [vmem:[%s5966_s8] sm:$0xff] }
 0xac7   : > { %4624 = vmatprep.mubr.msk.f32.mxu0 %vm5987_vm14, %v5029_v33  ;;  %4635 = vmatprep.mubr.msk.f32.mxu1 %vm5987_vm14, %v5029_v33  ;;  %vm6033_vm2 = vmmov %vm6032_vm3 }
 0xac8   : > { %vm6034_vm14 = vmmov %vm6033_vm2 }
 0xac9   : > { %4820 = vmatpush3.bf16.msk.msra.mxu0 %vm5833_vm7, %v5027_v31  ;;  %4826 = vmatpush3.bf16.msk.msra.mxu1 %vm5837_vm11, %v5027_v31  ;;  %vm3809_vm7 = vcmask 130048  }
 0xacc   : > { %4625 = vmatmul.mubr.msk.f32.vlgmr.msra.gmra.mrb[32].mxu0 %vm6031_vm13, %v3377_v32  ;;  %4636 = vmatmul.mubr.msk.f32.vlgmr.msra.gmra.mrb[26].mxu1 %vm6032_vm3, %v3377_v32 }
 0xacd   : > { %4646 = vmatprep.mubr.msk.f32.mxu0 %vm6033_vm2, %v3714_v27 }
 0xb97   : > { %v3464_v20 = vpop.f32.mrb[30].mxu0  ;;  %v3546_v33 = vpop.f32.mrb[24].mxu1 }
 0xb98   : > { %v4827_v21 = vpack.c.bf16 %v3546_v33, %v3464_v20  ;;  %v4604_v22 = vpop.f32.mrb[31].mxu0  ;;  %v4615_v30 = vpop.f32.mrb[25].mxu1 }
 0xb9a   : > { %4828 = vmatprep.subr.bf16.mxu0 %v4827_v21 }
 0xb9b   : > { %4830 = vmatpush3.bf16.msra.mxu0 %v4827_v21 }
 0xb9f   : > { %v3628_v31 = vpop.f32.mrb[32].mxu0  ;;  %v3710_v25 = vpop.f32.mrb[26].mxu1 }
 0xba0   : > { %v4831_v3 = vpack.c.bf16 %v3710_v25, %v3628_v31  ;;  %v4626_v61 = vpop.f32.mrb[33].mxu0  ;;  %v4637_v35 = vpop.f32.mrb[27].mxu1 }
 0xba2   : > { %4832 = vmatprep.subr.bf16.mxu0 %v4831_v3 }
 0xba3   : > { %4834 = vmatpush3.bf16.msra.mxu0 %v4831_v3 }
 0xba6   : > { %4647 = vmatmul.mubr.msk.f32.vlgmr.msra.gmra.mrb[34].mxu0 %vm6034_vm14, %v3715_v38 }
 0xc79   : > { %v4648_v39 = vpop.f32.mrb[34].mxu0 }
 0xc7a   : > { %v3806_v44 = vadd.f32 %v4648_v39, %v3726_v2  ;;  %v3800_v45 = vpop.f32.mrb[35].mxu0 }
 0xc7b   : > { %v3801_v48 = vadd.f32 %v3800_v45, %v3721_v43 }
 0xc7c   : > { %3811 = vst.msk [vmem:[%s350_s20 + $0x8] sm:$0xff] %vm3809_vm7, %v3806_v44 }
 0xc7d   : > { %3810 = vst.msk [vmem:[%s350_s20] sm:$0xff] %vm3809_vm7, %v3801_v48 }
 0xc7e   : > { %4974 = shalt.err (!%p4971_p3)
}
 0xc7f   : > { %s4975_s12 = scalar_lea.hbm %s5915_s28, 256  ;;  %s4979_s26 = scalar_lea.hbm %s5968_s10, 512 }
 0xc80   : > { %p4976_p4 = scmp.ne.s32.totalorder %s5915_s28, %s4975_s12  ;;  %p4980_p9 = scmp.lt.u32.totalorder %s5915_s28, %s5968_s10 }
 0xc81   : > { %p4981_p10 = scmp.lt.u32.totalorder %s4979_s26, %s4975_s12  ;;  %p4983_p12 = scmp.lt.u32.totalorder %s4975_s12, %s5915_s28 }
 0xc82   : > { %p4977_p7 = pnand %p4976_p4, %p5134_p5 }
 0xc83   : > { %p4982_p11 = por %p4981_p10, %p4980_p9 }
 0xc84   : > { %p4978_p8 = pneg %p4977_p7 }
 0xc85   : > { %p4984_p13 = por %p4983_p12, %p4982_p11 }
 0xc87   : > { %p4985_p0 = pnand %p4984_p13, %p4978_p8 }
 0xc89   : > { %4988 = shalt.err (!%p4985_p0)
}
 0xc8a   : > { %s5039_s29 = smov 128   ;;  %s5040_s11 = smov 8  }
 0xc8b   : > { %4863 = dma.vmem_to_hbm [thread:$0]  (%p5134_p5), %s5910_s21, 256, %s5915_s28, %s5917_s17, %s5039_s29, %s5039_s29, %s5040_s11  }
 0xc8c PF: > { %p4869_p1 = scmp.ge.s32.totalorder %s5023_s16, 2  ;;  %s3841_s18 = sand.u32 1, %s5011_s13  }
 0xc8d   : > { %s3842_s12 = scalar_lea.sflag [#allocation3], %s3841_s18 }
 0xc8e   : > { %p4866_p2 = pnand %p4869_p1, %p5138_p6 }
 0xc90   : > { %5006 = dma.done.wait (!%p4866_p2), %s3842_s12, 256  }
 0xc91   : > { %5008 = vsyncadd (!%p4866_p2), %s3842_s12, 4294967040  ;;  %p20_p3 = scmp.ge.s32.totalorder %s5121_s19, 4   ;;  %s6035_s13 = smov %s5015_s14 }
 0xc92   : > { %s6036_s14 = smov %s5019_s15  ;;  %s6037_s15 = smov %s5132_s22 }
 0xc93   : > { %s6038_s16 = smov %s5121_s19  ;;  %22 = sbr.rel (!%p20_p3) target bundleno = 3 (0x3), region = 107 }
 0xc9a   :  { %3847 = vsyncpa [#allocation3], 1 }
 0xc9b   :  { %3849 = vsyncpa [#allocation3 + $0x1], 1 }

</bundles_post_ra>
